<compile_context>
chip_gen: v7x
topology: tpu7x:2x2x1
jax: 0.10.0
libtpu: 0.0.40
codegen_flags: <defaults>
</compile_context>

<pallas_src>
import functools

import jax
import jax.numpy as jnp
from jax.experimental import pallas as pl
from jax.experimental.pallas import tpu as pltpu

HIDDEN = 256
NEG_SLOPE = 0.01  # F.leaky_relu default negative_slope


def _round_up(n, m):
    return ((n + m - 1) // m) * m


def _leaky_relu(x):
    return jnp.where(x > 0, x, NEG_SLOPE * x)


def dqn_kernel(x_ref,
               w1_ref, b1_ref,
               w2_ref, b2_ref,
               w3_ref, b3_ref,
               w4_ref, b4_ref,
               o_ref):
    # Weights carry the compute dtype (f32 or bf16). Activations are cast only
    # right before each MXU matmul; accumulation / bias add / leaky_relu are f32
    # (keeps VALU work native f32 on v5e, free on v6e/v7x).
    cdt = w1_ref.dtype

    h = x_ref[...].astype(cdt)
    h = jnp.dot(h, w1_ref[...], preferred_element_type=jnp.float32) + b1_ref[...]
    h = _leaky_relu(h)
    # dropout(0.1) -> identity at inference

    h = jnp.dot(h.astype(cdt), w2_ref[...], preferred_element_type=jnp.float32) + b2_ref[...]
    h = _leaky_relu(h)

    h = jnp.dot(h.astype(cdt), w3_ref[...], preferred_element_type=jnp.float32) + b3_ref[...]
    h = _leaky_relu(h)

    out = jnp.dot(h.astype(cdt), w4_ref[...], preferred_element_type=jnp.float32) + b4_ref[...]
    o_ref[...] = out.astype(o_ref.dtype)


@functools.partial(jax.jit, static_argnames=("compute_dtype", "batch_tile"))
def dqn_forward(x, params, *, compute_dtype=jnp.float32, batch_tile=256):
    """x: [B, input_dim] float32. params: dict from init_params. Returns [B, output_dim] f32."""
    B, in_dim = x.shape
    out_dim = params["w4"].shape[1]

    # Pad features to full lanes and the batch to a whole number of MXU-height tiles.
    in_pad = _round_up(in_dim, 128)
    out_pad = _round_up(out_dim, 128)
    tb = batch_tile
    b_pad = _round_up(max(B, 1), tb)

    x_p = jnp.pad(x, ((0, b_pad - B), (0, in_pad - in_dim)))

    # Weights in compute dtype; biases stay f32 (added post-accumulation).
    w1 = jnp.pad(params["w1"], ((0, in_pad - in_dim), (0, 0))).astype(compute_dtype)
    w2 = params["w2"].astype(compute_dtype)
    w3 = params["w3"].astype(compute_dtype)
    w4 = jnp.pad(params["w4"], ((0, 0), (0, out_pad - out_dim))).astype(compute_dtype)
    b1 = params["b1"]
    b2 = params["b2"]
    b3 = params["b3"]
    b4 = jnp.pad(params["b4"], ((0, 0), (0, out_pad - out_dim)))

    grid = (pl.cdiv(b_pad, tb),)

    # x / out move with the batch grid; weights & biases use a constant block
    # index so Pallas keeps them VMEM-resident (no per-step re-DMA).
    in_specs = [
        pl.BlockSpec((tb, in_pad), lambda i: (i, 0)),          # x tile
        pl.BlockSpec((in_pad, HIDDEN), lambda i: (0, 0)),       # w1
        pl.BlockSpec((1, HIDDEN), lambda i: (0, 0)),            # b1
        pl.BlockSpec((HIDDEN, HIDDEN), lambda i: (0, 0)),       # w2
        pl.BlockSpec((1, HIDDEN), lambda i: (0, 0)),            # b2
        pl.BlockSpec((HIDDEN, HIDDEN), lambda i: (0, 0)),       # w3
        pl.BlockSpec((1, HIDDEN), lambda i: (0, 0)),            # b3
        pl.BlockSpec((HIDDEN, out_pad), lambda i: (0, 0)),      # w4
        pl.BlockSpec((1, out_pad), lambda i: (0, 0)),           # b4
    ]
    out_spec = pl.BlockSpec((tb, out_pad), lambda i: (i, 0))

    bytes_per = jnp.dtype(compute_dtype).itemsize
    flops = 2 * b_pad * (in_pad * HIDDEN + HIDDEN * HIDDEN * 2 + HIDDEN * out_pad)
    bytes_accessed = (
        x_p.size * 4
        + (w1.size + w2.size + w3.size + w4.size) * bytes_per
        + (b1.size + b2.size + b3.size + b4.size) * 4
        + b_pad * out_pad * 4
    )

    out_p = pl.pallas_call(
        dqn_kernel,
        out_shape=jax.ShapeDtypeStruct((b_pad, out_pad), jnp.float32),
        grid=grid,
        in_specs=in_specs,
        out_specs=out_spec,
        compiler_params=pltpu.CompilerParams(
            dimension_semantics=("parallel",)),
        cost_estimate=pl.CostEstimate(
            flops=flops, transcendentals=0, bytes_accessed=bytes_accessed),
    )(x_p, w1, b1, w2, b2, w3, b3, w4, b4)

    return out_p[:B, :out_dim]


def init_params(key, input_dim, output_dim):
    """Deterministic init mimicking nn.Linear's U(-1/sqrt(fan_in), 1/sqrt(fan_in)).

    Weights are stored [in_features, out_features] (transpose of PyTorch layout)
    so the kernel computes y = x @ W + b directly on the MXU. Biases are [1, out].
    """
    dims = [(input_dim, HIDDEN), (HIDDEN, HIDDEN), (HIDDEN, HIDDEN), (HIDDEN, output_dim)]
    params = {}
    for i, (fan_in, fan_out) in enumerate(dims, start=1):
        key, kw, kb = jax.random.split(key, 3)
        bound = 1.0 / jnp.sqrt(jnp.float32(fan_in))
        params[f"w{i}"] = jax.random.uniform(
            kw, (fan_in, fan_out), jnp.float32, minval=-bound, maxval=bound)
        params[f"b{i}"] = jax.random.uniform(
            kb, (1, fan_out), jnp.float32, minval=-bound, maxval=bound)
    return params


def reference_forward(x, params):
    h = x
    for i in (1, 2, 3):
        h = _leaky_relu(h @ params[f"w{i}"] + params[f"b{i}"])
    return h @ params["w4"] + params["b4"]


if __name__ == "__main__":
    B, input_dim, output_dim = 8, 32, 8

    key = jax.random.PRNGKey(0)
    key, kx = jax.random.split(key)
    x = jax.random.normal(kx, (B, input_dim), jnp.float32)
    params = init_params(key, input_dim, output_dim)

    ref = reference_forward(x, params)

    # f32 compute path: strict check.
    out_f32 = dqn_forward(x, params, compute_dtype=jnp.float32)
    jax.block_until_ready(out_f32)
    assert out_f32.shape == (B, output_dim)
    assert jnp.allclose(out_f32, ref, atol=1e-4, rtol=1e-4), "f32 mismatch vs. JAX reference"

    # bf16-weight path (v6e/v7x MXU rate + 2x less weight DMA): looser tolerance.
    out_bf16 = dqn_forward(x, params, compute_dtype=jnp.bfloat16)
    jax.block_until_ready(out_bf16)
    assert out_bf16.shape == (B, output_dim)
    assert jnp.allclose(out_bf16, ref, atol=5e-2, rtol=5e-2), "bf16 mismatch vs. JAX reference"

    print("KERNEL_OK")
</pallas_src>

<mosaic_0001>
module attributes {stable_mosaic.version = 11 : i64} {
  func.func @dqn_kernel(%arg0: i32, %arg1: memref<256x128xf32, #tpu.memory_space<vmem>>, %arg2: memref<128x256xf32, #tpu.memory_space<vmem>>, %arg3: memref<1x256xf32, #tpu.memory_space<vmem>>, %arg4: memref<256x256xf32, #tpu.memory_space<vmem>>, %arg5: memref<1x256xf32, #tpu.memory_space<vmem>>, %arg6: memref<256x256xf32, #tpu.memory_space<vmem>>, %arg7: memref<1x256xf32, #tpu.memory_space<vmem>>, %arg8: memref<256x128xf32, #tpu.memory_space<vmem>>, %arg9: memref<1x128xf32, #tpu.memory_space<vmem>>, %arg10: memref<256x128xf32, #tpu.memory_space<vmem>>) attributes {dimension_semantics = [#tpu.dimension_semantics<parallel>], iteration_bounds = array<i64: 1>, scalar_prefetch = 0 : i64, scratch_operands = 0 : i64, tpu.core_type = #tpu.core_type<tc>, window_params = [{transform_indices = @transform_0, window_bounds = array<i64: 256, 128>}, {pipeline_mode = #tpu.pipeline_mode<synchronous>, transform_indices = @transform_1, window_bounds = array<i64: 128, 256>}, {pipeline_mode = #tpu.pipeline_mode<synchronous>, transform_indices = @transform_2, window_bounds = array<i64: 1, 256>}, {pipeline_mode = #tpu.pipeline_mode<synchronous>, transform_indices = @transform_3, window_bounds = array<i64: 256, 256>}, {pipeline_mode = #tpu.pipeline_mode<synchronous>, transform_indices = @transform_4, window_bounds = array<i64: 1, 256>}, {pipeline_mode = #tpu.pipeline_mode<synchronous>, transform_indices = @transform_5, window_bounds = array<i64: 256, 256>}, {pipeline_mode = #tpu.pipeline_mode<synchronous>, transform_indices = @transform_6, window_bounds = array<i64: 1, 256>}, {pipeline_mode = #tpu.pipeline_mode<synchronous>, transform_indices = @transform_7, window_bounds = array<i64: 256, 128>}, {pipeline_mode = #tpu.pipeline_mode<synchronous>, transform_indices = @transform_8, window_bounds = array<i64: 1, 128>}, {transform_indices = @transform_9, window_bounds = array<i64: 256, 128>}]} {
    %c0 = arith.constant 0 : index
    %c0_0 = arith.constant 0 : index
    %0 = vector.load %arg1[%c0, %c0_0] : memref<256x128xf32, #tpu.memory_space<vmem>>, vector<256x128xf32>
    %c0_1 = arith.constant 0 : index
    %c0_2 = arith.constant 0 : index
    %1 = vector.load %arg2[%c0_1, %c0_2] : memref<128x256xf32, #tpu.memory_space<vmem>>, vector<128x256xf32>
    %cst = arith.constant dense<0.000000e+00> : vector<256x256xf32>
    %2 = tpu.matmul %0, %1, %cst {dimension_numbers = #tpu.dot_dimension_numbers<[1], [0], [0], [1], [0, 0, 1, 1], [], []>} : vector<256x128xf32>, vector<128x256xf32>, vector<256x256xf32> -> vector<256x256xf32>
    %c0_3 = arith.constant 0 : index
    %c0_4 = arith.constant 0 : index
    %3 = vector.load %arg3[%c0_3, %c0_4] : memref<1x256xf32, #tpu.memory_space<vmem>>, vector<1x256xf32>
    %4 = vector.broadcast %3 : vector<1x256xf32> to vector<256x256xf32>
    %5 = arith.addf %2, %4 : vector<256x256xf32>
    %cst_5 = arith.constant 0.000000e+00 : f32
    %6 = vector.broadcast %cst_5 : f32 to vector<256x256xf32>
    %7 = arith.cmpf ogt, %5, %6 : vector<256x256xf32>
    %cst_6 = arith.constant 0.00999999977 : f32
    %8 = vector.broadcast %cst_6 : f32 to vector<256x256xf32>
    %9 = arith.mulf %8, %5 : vector<256x256xf32>
    %10 = arith.select %7, %5, %9 : vector<256x256xi1>, vector<256x256xf32>
    %c0_7 = arith.constant 0 : index
    %c0_8 = arith.constant 0 : index
    %11 = vector.load %arg4[%c0_7, %c0_8] : memref<256x256xf32, #tpu.memory_space<vmem>>, vector<256x256xf32>
    %cst_9 = arith.constant dense<0.000000e+00> : vector<256x256xf32>
    %12 = tpu.matmul %10, %11, %cst_9 {dimension_numbers = #tpu.dot_dimension_numbers<[1], [0], [0], [1], [0, 0, 1, 1], [], []>} : vector<256x256xf32>, vector<256x256xf32>, vector<256x256xf32> -> vector<256x256xf32>
    %c0_10 = arith.constant 0 : index
    %c0_11 = arith.constant 0 : index
    %13 = vector.load %arg5[%c0_10, %c0_11] : memref<1x256xf32, #tpu.memory_space<vmem>>, vector<1x256xf32>
    %14 = vector.broadcast %13 : vector<1x256xf32> to vector<256x256xf32>
    %15 = arith.addf %12, %14 : vector<256x256xf32>
    %cst_12 = arith.constant 0.000000e+00 : f32
    %16 = vector.broadcast %cst_12 : f32 to vector<256x256xf32>
    %17 = arith.cmpf ogt, %15, %16 : vector<256x256xf32>
    %cst_13 = arith.constant 0.00999999977 : f32
    %18 = vector.broadcast %cst_13 : f32 to vector<256x256xf32>
    %19 = arith.mulf %18, %15 : vector<256x256xf32>
    %20 = arith.select %17, %15, %19 : vector<256x256xi1>, vector<256x256xf32>
    %c0_14 = arith.constant 0 : index
    %c0_15 = arith.constant 0 : index
    %21 = vector.load %arg6[%c0_14, %c0_15] : memref<256x256xf32, #tpu.memory_space<vmem>>, vector<256x256xf32>
    %cst_16 = arith.constant dense<0.000000e+00> : vector<256x256xf32>
    %22 = tpu.matmul %20, %21, %cst_16 {dimension_numbers = #tpu.dot_dimension_numbers<[1], [0], [0], [1], [0, 0, 1, 1], [], []>} : vector<256x256xf32>, vector<256x256xf32>, vector<256x256xf32> -> vector<256x256xf32>
    %c0_17 = arith.constant 0 : index
    %c0_18 = arith.constant 0 : index
    %23 = vector.load %arg7[%c0_17, %c0_18] : memref<1x256xf32, #tpu.memory_space<vmem>>, vector<1x256xf32>
    %24 = vector.broadcast %23 : vector<1x256xf32> to vector<256x256xf32>
    %25 = arith.addf %22, %24 : vector<256x256xf32>
    %cst_19 = arith.constant 0.000000e+00 : f32
    %26 = vector.broadcast %cst_19 : f32 to vector<256x256xf32>
    %27 = arith.cmpf ogt, %25, %26 : vector<256x256xf32>
    %cst_20 = arith.constant 0.00999999977 : f32
    %28 = vector.broadcast %cst_20 : f32 to vector<256x256xf32>
    %29 = arith.mulf %28, %25 : vector<256x256xf32>
    %30 = arith.select %27, %25, %29 : vector<256x256xi1>, vector<256x256xf32>
    %c0_21 = arith.constant 0 : index
    %c0_22 = arith.constant 0 : index
    %31 = vector.load %arg8[%c0_21, %c0_22] : memref<256x128xf32, #tpu.memory_space<vmem>>, vector<256x128xf32>
    %cst_23 = arith.constant dense<0.000000e+00> : vector<256x128xf32>
    %32 = tpu.matmul %30, %31, %cst_23 {dimension_numbers = #tpu.dot_dimension_numbers<[1], [0], [0], [1], [0, 0, 1, 1], [], []>} : vector<256x256xf32>, vector<256x128xf32>, vector<256x128xf32> -> vector<256x128xf32>
    %c0_24 = arith.constant 0 : index
    %c0_25 = arith.constant 0 : index
    %33 = vector.load %arg9[%c0_24, %c0_25] : memref<1x128xf32, #tpu.memory_space<vmem>>, vector<1x128xf32>
    %34 = vector.broadcast %33 : vector<1x128xf32> to vector<256x128xf32>
    %35 = arith.addf %32, %34 : vector<256x128xf32>
    %c0_26 = arith.constant 0 : index
    %c0_27 = arith.constant 0 : index
    %36 = vector.load %arg10[%c0_26, %c0_27] : memref<256x128xf32, #tpu.memory_space<vmem>>, vector<256x128xf32>
    tpu.vector_store %arg10[%c0_26, %c0_27], %35 {strides = array<i32>} : memref<256x128xf32, #tpu.memory_space<vmem>>, vector<256x128xf32>,
    return
  }
  func.func @transform_0(%arg0: i32) -> (i32, i32) {
    %c0_i32 = arith.constant 0 : i32
    %c0_i32_0 = arith.constant 0 : i32
    return %arg0, %c0_i32 : i32, i32
  }
  func.func @transform_1(%arg0: i32) -> (i32, i32) {
    %c0_i32 = arith.constant 0 : i32
    %c0_i32_0 = arith.constant 0 : i32
    %c0_i32_1 = arith.constant 0 : i32
    return %c0_i32, %c0_i32_0 : i32, i32
  }
  func.func @transform_2(%arg0: i32) -> (i32, i32) {
    %c0_i32 = arith.constant 0 : i32
    %c0_i32_0 = arith.constant 0 : i32
    %c0_i32_1 = arith.constant 0 : i32
    return %c0_i32, %c0_i32_0 : i32, i32
  }
  func.func @transform_3(%arg0: i32) -> (i32, i32) {
    %c0_i32 = arith.constant 0 : i32
    %c0_i32_0 = arith.constant 0 : i32
    %c0_i32_1 = arith.constant 0 : i32
    return %c0_i32, %c0_i32_0 : i32, i32
  }
  func.func @transform_4(%arg0: i32) -> (i32, i32) {
    %c0_i32 = arith.constant 0 : i32
    %c0_i32_0 = arith.constant 0 : i32
    %c0_i32_1 = arith.constant 0 : i32
    return %c0_i32, %c0_i32_0 : i32, i32
  }
  func.func @transform_5(%arg0: i32) -> (i32, i32) {
    %c0_i32 = arith.constant 0 : i32
    %c0_i32_0 = arith.constant 0 : i32
    %c0_i32_1 = arith.constant 0 : i32
    return %c0_i32, %c0_i32_0 : i32, i32
  }
  func.func @transform_6(%arg0: i32) -> (i32, i32) {
    %c0_i32 = arith.constant 0 : i32
    %c0_i32_0 = arith.constant 0 : i32
    %c0_i32_1 = arith.constant 0 : i32
    return %c0_i32, %c0_i32_0 : i32, i32
  }
  func.func @transform_7(%arg0: i32) -> (i32, i32) {
    %c0_i32 = arith.constant 0 : i32
    %c0_i32_0 = arith.constant 0 : i32
    %c0_i32_1 = arith.constant 0 : i32
    return %c0_i32, %c0_i32_0 : i32, i32
  }
  func.func @transform_8(%arg0: i32) -> (i32, i32) {
    %c0_i32 = arith.constant 0 : i32
    %c0_i32_0 = arith.constant 0 : i32
    %c0_i32_1 = arith.constant 0 : i32
    return %c0_i32, %c0_i32_0 : i32, i32
  }
  func.func @transform_9(%arg0: i32) -> (i32, i32) {
    %c0_i32 = arith.constant 0 : i32
    %c0_i32_0 = arith.constant 0 : i32
    return %arg0, %c0_i32 : i32, i32
  }
}

</mosaic_0001>

<bundles_post_ra>
// kernel: dqn_forward.1
= control target key start
LH: loop header
LB: loop body
LE: loop exit
PB: predicated region body
PF: predicated region fallthrough
CT: control target
= control target key end

     0   :  { %v2150_v3 = vmov 0.0   ;;  %s3296_s1 = inlined_call_operand.vmem [shape: f32[128,256], index: 1, kind: input, shape index: {}]   ;;  %s3297_s0 = inlined_call_operand.vmem [shape: f32[256,128], index: 0, kind: input, shape index: {}]   ;;  %s3298_s3 = inlined_call_operand.vmem [shape: f32[256,256], index: 3, kind: input, shape index: {}]   ;;  %s3299_s5 = inlined_call_operand.vmem [shape: f32[256,256], index: 5, kind: input, shape index: {}]   ;;  %s3300_s2 = inlined_call_operand.vmem [shape: f32[1,256], index: 2, kind: input, shape index: {}]   ;;  %s3301_s7 = inlined_call_operand.vmem [shape: f32[256,128], index: 7, kind: input, shape index: {}]   ;;  %s3302_s4 = inlined_call_operand.vmem [shape: f32[1,256], index: 4, kind: input, shape index: {}]   ;;  %s3303_s6 = inlined_call_operand.vmem [shape: f32[1,256], index: 6, kind: input, shape index: {}]   ;;  %s3304_s8 = inlined_call_operand.vmem [shape: f32[1,128], index: 8, kind: input, shape index: {}]   ;;  %s3305_s9 = inlined_call_operand.vmem [shape: f32[256,128], index: 9, kind: output, shape index: {}]  }
   0x1   :  { %v65_v0 = vld [vmem:[%s3296_s1 + $0x8] sm:$0xff]  ;;  %v67_v1 = vld [vmem:[%s3296_s1 + $0x18] sm:$0xff]  ;;  %v64_v2 = vld [vmem:[%s3296_s1] sm:$0xff]  ;;  %172 = vmatprep.mubr.f32.mxu0 %v2150_v3 }
   0x2   :  { %v1908_v4 = vpack.c.bf16 %v67_v1, %v65_v0  ;;  %v66_v5 = vld [vmem:[%s3296_s1 + $0x10] sm:$0xff]  ;;  %v69_v6 = vld [vmem:[%s3296_s1 + $0x28] sm:$0xff]  ;;  %v71_v7 = vld [vmem:[%s3296_s1 + $0x38] sm:$0xff] }
   0x3   :  { %v1910_v8 = vpack.c.bf16 %v66_v5, %v64_v2  ;;  %v1912_v9 = vpack.c.bf16 %v71_v7, %v69_v6  ;;  %v68_v10 = vld [vmem:[%s3296_s1 + $0x20] sm:$0xff]  ;;  %v70_v11 = vld [vmem:[%s3296_s1 + $0x30] sm:$0xff]  ;;  %v73_v12 = vld [vmem:[%s3296_s1 + $0x48] sm:$0xff] }
   0x4   :  { %1909 = vmatprep.subr.bf16.mxu0 %v1908_v4  ;;  %v75_v13 = vld [vmem:[%s3296_s1 + $0x58] sm:$0xff]  ;;  %v1914_v14 = vpack.c.bf16 %v70_v11, %v68_v10  ;;  %v72_v16 = vld [vmem:[%s3296_s1 + $0x40] sm:$0xff]  ;;  %v74_v17 = vld [vmem:[%s3296_s1 + $0x50] sm:$0xff] }
   0x5   :  { %1911 = vmatpush1.bf16.msra.mxu0 %v1910_v8  ;;  %v1916_v15 = vpack.c.bf16 %v75_v13, %v73_v12  ;;  %v77_v18 = vld [vmem:[%s3296_s1 + $0x68] sm:$0xff]  ;;  %v79_v19 = vld [vmem:[%s3296_s1 + $0x78] sm:$0xff]  ;;  %v1918_v20 = vpack.c.bf16 %v74_v17, %v72_v16  ;;  %v76_v22 = vld [vmem:[%s3296_s1 + $0x60] sm:$0xff] }
   0x6   :  { %1913 = vmatprep.subr.bf16.mxu0 %v1912_v9  ;;  %v1920_v21 = vpack.c.bf16 %v79_v19, %v77_v18  ;;  %v78_v23 = vld [vmem:[%s3296_s1 + $0x70] sm:$0xff]  ;;  %v81_v24 = vld [vmem:[%s3296_s1 + $0x88] sm:$0xff]  ;;  %v83_v25 = vld [vmem:[%s3296_s1 + $0x98] sm:$0xff] }
   0x7   :  { %v1922_v26 = vpack.c.bf16 %v78_v23, %v76_v22  ;;  %v1924_v27 = vpack.c.bf16 %v83_v25, %v81_v24  ;;  %v80_v28 = vld [vmem:[%s3296_s1 + $0x80] sm:$0xff]  ;;  %v82_v29 = vld [vmem:[%s3296_s1 + $0x90] sm:$0xff]  ;;  %v85_v30 = vld [vmem:[%s3296_s1 + $0xa8] sm:$0xff] }
   0x8   :  { %v87_v31 = vld [vmem:[%s3296_s1 + $0xb8] sm:$0xff]  ;;  %v1926_v32 = vpack.c.bf16 %v82_v29, %v80_v28  ;;  %v84_v34 = vld [vmem:[%s3296_s1 + $0xa0] sm:$0xff]  ;;  %v86_v35 = vld [vmem:[%s3296_s1 + $0xb0] sm:$0xff] }
   0x9   :  { %1915 = vmatpush1.bf16.msra.mxu0 %v1914_v14  ;;  %v1928_v33 = vpack.c.bf16 %v87_v31, %v85_v30  ;;  %v89_v36 = vld [vmem:[%s3296_s1 + $0xc8] sm:$0xff]  ;;  %v91_v37 = vld [vmem:[%s3296_s1 + $0xd8] sm:$0xff]  ;;  %v1930_v38 = vpack.c.bf16 %v86_v35, %v84_v34  ;;  %v88_v40 = vld [vmem:[%s3296_s1 + $0xc0] sm:$0xff] }
   0xa   :  { %1917 = vmatprep.subr.bf16.mxu0 %v1916_v15  ;;  %v1932_v39 = vpack.c.bf16 %v91_v37, %v89_v36  ;;  %v90_v41 = vld [vmem:[%s3296_s1 + $0xd0] sm:$0xff]  ;;  %v93_v42 = vld [vmem:[%s3296_s1 + $0xe8] sm:$0xff]  ;;  %v95_v43 = vld [vmem:[%s3296_s1 + $0xf8] sm:$0xff] }
   0xb   :  { %v1934_v44 = vpack.c.bf16 %v90_v41, %v88_v40  ;;  %v1936_v45 = vpack.c.bf16 %v95_v43, %v93_v42  ;;  %v92_v46 = vld [vmem:[%s3296_s1 + $0xe0] sm:$0xff]  ;;  %v94_v47 = vld [vmem:[%s3296_s1 + $0xf0] sm:$0xff]  ;;  %v558_v50 = vld [vmem:[%s3298_s3 + $0x8] sm:$0xff] }
   0xc   :  { %v1938_v48 = vpack.c.bf16 %v94_v47, %v92_v46  ;;  %v32_v49 = vld [vmem:[%s3297_s0] sm:$0xff]  ;;  %v560_v51 = vld [vmem:[%s3298_s3 + $0x18] sm:$0xff]  ;;  %v559_v54 = vld [vmem:[%s3298_s3 + $0x10] sm:$0xff] }
   0xd   :  { %1919 = vmatpush1.bf16.msra.mxu0 %v1918_v20  ;;  %v557_v52 = vld [vmem:[%s3298_s3] sm:$0xff]  ;;  %v1940_v53 = vpack.c.bf16 %v560_v51, %v558_v50  ;;  %v562_v55 = vld [vmem:[%s3298_s3 + $0x28] sm:$0xff]  ;;  %v564_v56 = vld [vmem:[%s3298_s3 + $0x38] sm:$0xff] }
   0xe   :  { %1921 = vmatprep.subr.bf16.mxu0 %v1920_v21  ;;  %v1942_v57 = vpack.c.bf16 %v559_v54, %v557_v52  ;;  %v1944_v58 = vpack.c.bf16 %v564_v56, %v562_v55  ;;  %v561_v59 = vld [vmem:[%s3298_s3 + $0x20] sm:$0xff]  ;;  %v563_v60 = vld [vmem:[%s3298_s3 + $0x30] sm:$0xff]  ;;  %v566_v61 = vld [vmem:[%s3298_s3 + $0x48] sm:$0xff] }
   0xf   :  { %1941 = vmatprep.subr.bf16.mxu1 %v1940_v53  ;;  %v568_v62 = vld [vmem:[%s3298_s3 + $0x58] sm:$0xff]  ;;  %v33_v63 = vld [vmem:[%s3297_s0 + $0x8] sm:$0xff]  ;;  %v1946_v0 = vpack.c.bf16 %v563_v60, %v561_v59  ;;  %v565_v2 = vld [vmem:[%s3298_s3 + $0x40] sm:$0xff] }
  0x10   :  { %1943 = vmatpush1.bf16.msra.mxu1 %v1942_v57  ;;  %v1948_v1 = vpack.c.bf16 %v568_v62, %v566_v61  ;;  %v567_v4 = vld [vmem:[%s3298_s3 + $0x50] sm:$0xff]  ;;  %v570_v5 = vld [vmem:[%s3298_s3 + $0x68] sm:$0xff]  ;;  %v572_v6 = vld [vmem:[%s3298_s3 + $0x78] sm:$0xff] }
  0x11   :  { %1923 = vmatpush1.bf16.msra.mxu0 %v1922_v26  ;;  %1945 = vmatprep.subr.bf16.mxu1 %v1944_v58  ;;  %v34_v7 = vld [vmem:[%s3297_s0 + $0x10] sm:$0xff]  ;;  %v1950_v8 = vpack.c.bf16 %v567_v4, %v565_v2  ;;  %v1952_v9 = vpack.c.bf16 %v572_v6, %v570_v5  ;;  %v569_v10 = vld [vmem:[%s3298_s3 + $0x60] sm:$0xff]  ;;  %v574_v12 = vld [vmem:[%s3298_s3 + $0x88] sm:$0xff] }
  0x12   :  { %1925 = vmatprep.subr.bf16.mxu0 %v1924_v27  ;;  %v571_v11 = vld [vmem:[%s3298_s3 + $0x70] sm:$0xff]  ;;  %v576_v13 = vld [vmem:[%s3298_s3 + $0x98] sm:$0xff]  ;;  %v573_v17 = vld [vmem:[%s3298_s3 + $0x80] sm:$0xff] }
  0x13   :  { %v35_v14 = vld [vmem:[%s3297_s0 + $0x18] sm:$0xff]  ;;  %v1954_v15 = vpack.c.bf16 %v571_v11, %v569_v10  ;;  %v1956_v16 = vpack.c.bf16 %v576_v13, %v574_v12  ;;  %v575_v18 = vld [vmem:[%s3298_s3 + $0x90] sm:$0xff]  ;;  %v578_v19 = vld [vmem:[%s3298_s3 + $0xa8] sm:$0xff] }
  0x14   :  { %1947 = vmatpush1.bf16.msra.mxu1 %v1946_v0  ;;  %v580_v20 = vld [vmem:[%s3298_s3 + $0xb8] sm:$0xff]  ;;  %v36_v21 = vld [vmem:[%s3297_s0 + $0x20] sm:$0xff]  ;;  %v1958_v22 = vpack.c.bf16 %v575_v18, %v573_v17  ;;  %v579_v25 = vld [vmem:[%s3298_s3 + $0xb0] sm:$0xff] }
  0x15   :  { %1927 = vmatpush1.bf16.msra.mxu0 %v1926_v32  ;;  %1949 = vmatprep.subr.bf16.mxu1 %v1948_v1  ;;  %v1960_v23 = vpack.c.bf16 %v580_v20, %v578_v19  ;;  %v577_v24 = vld [vmem:[%s3298_s3 + $0xa0] sm:$0xff]  ;;  %v582_v26 = vld [vmem:[%s3298_s3 + $0xc8] sm:$0xff]  ;;  %v584_v27 = vld [vmem:[%s3298_s3 + $0xd8] sm:$0xff] }
  0x16   :  { %1929 = vmatprep.subr.bf16.mxu0 %v1928_v33  ;;  %v37_v28 = vld [vmem:[%s3297_s0 + $0x28] sm:$0xff]  ;;  %v1962_v29 = vpack.c.bf16 %v579_v25, %v577_v24  ;;  %v1964_v30 = vpack.c.bf16 %v584_v27, %v582_v26  ;;  %v581_v31 = vld [vmem:[%s3298_s3 + $0xc0] sm:$0xff]  ;;  %v583_v32 = vld [vmem:[%s3298_s3 + $0xd0] sm:$0xff] }
  0x17   :  { %v586_v33 = vld [vmem:[%s3298_s3 + $0xe8] sm:$0xff]  ;;  %v588_v34 = vld [vmem:[%s3298_s3 + $0xf8] sm:$0xff]  ;;  %v38_v35 = vld [vmem:[%s3297_s0 + $0x30] sm:$0xff]  ;;  %v1966_v36 = vpack.c.bf16 %v583_v32, %v581_v31 }
  0x18   :  { %1951 = vmatpush1.bf16.msra.mxu1 %v1950_v8  ;;  %v1968_v37 = vpack.c.bf16 %v588_v34, %v586_v33  ;;  %v590_v40 = vld [vmem:[%s3298_s3 + $0x108] sm:$0xff]  ;;  %v592_v41 = vld [vmem:[%s3298_s3 + $0x118] sm:$0xff]  ;;  %v591_v46 = vld [vmem:[%s3298_s3 + $0x110] sm:$0xff] }
  0x19   :  { %1931 = vmatpush1.bf16.msra.mxu0 %v1930_v38  ;;  %1953 = vmatprep.subr.bf16.mxu1 %v1952_v9  ;;  %v585_v38 = vld [vmem:[%s3298_s3 + $0xe0] sm:$0xff]  ;;  %v39_v42 = vld [vmem:[%s3297_s0 + $0x38] sm:$0xff]  ;;  %v594_v47 = vld [vmem:[%s3298_s3 + $0x128] sm:$0xff] }
  0x1a   :  { %1933 = vmatprep.subr.bf16.mxu0 %v1932_v39  ;;  %v587_v39 = vld [vmem:[%s3298_s3 + $0xf0] sm:$0xff]  ;;  %v593_v52 = vld [vmem:[%s3298_s3 + $0x120] sm:$0xff]  ;;  %v598_v54 = vld [vmem:[%s3298_s3 + $0x148] sm:$0xff] }
  0x1b   :  { %v1970_v43 = vpack.c.bf16 %v587_v39, %v585_v38  ;;  %v595_v53 = vld [vmem:[%s3298_s3 + $0x130] sm:$0xff]  ;;  %v600_v55 = vld [vmem:[%s3298_s3 + $0x158] sm:$0xff]  ;;  %v41_v56 = vld [vmem:[%s3297_s0 + $0x48] sm:$0xff] }
  0x1c   :  { %1955 = vmatpush1.bf16.msra.mxu1 %v1954_v15  ;;  %v1978_v57 = vpack.c.bf16 %v595_v53, %v593_v52  ;;  %v1980_v58 = vpack.c.bf16 %v600_v55, %v598_v54  ;;  %v597_v59 = vld [vmem:[%s3298_s3 + $0x140] sm:$0xff]  ;;  %v599_v60 = vld [vmem:[%s3298_s3 + $0x150] sm:$0xff]  ;;  %v602_v61 = vld [vmem:[%s3298_s3 + $0x168] sm:$0xff] }
  0x1d   :  { %1935 = vmatpush1.bf16.msra.mxu0 %v1934_v44  ;;  %1957 = vmatprep.subr.bf16.mxu1 %v1956_v16  ;;  %v1972_v44 = vpack.c.bf16 %v592_v41, %v590_v40  ;;  %v604_v62 = vld [vmem:[%s3298_s3 + $0x178] sm:$0xff]  ;;  %v1982_v0 = vpack.c.bf16 %v599_v60, %v597_v59  ;;  %v601_v2 = vld [vmem:[%s3298_s3 + $0x160] sm:$0xff]  ;;  %v603_v4 = vld [vmem:[%s3298_s3 + $0x170] sm:$0xff] }
  0x1e   :  { %1937 = vmatprep.subr.bf16.mxu0 %v1936_v45  ;;  %v589_v45 = vld [vmem:[%s3298_s3 + $0x100] sm:$0xff]  ;;  %v1984_v1 = vpack.c.bf16 %v604_v62, %v602_v61  ;;  %v606_v5 = vld [vmem:[%s3298_s3 + $0x188] sm:$0xff]  ;;  %v608_v6 = vld [vmem:[%s3298_s3 + $0x198] sm:$0xff]  ;;  %v1986_v8 = vpack.c.bf16 %v603_v4, %v601_v2  ;;  %v98_v62 = vlaneseq }
  0x1f   :  { %v1974_v50 = vpack.c.bf16 %v591_v46, %v589_v45  ;;  %v1988_v9 = vpack.c.bf16 %v608_v6, %v606_v5  ;;  %v605_v10 = vld [vmem:[%s3298_s3 + $0x180] sm:$0xff]  ;;  %v607_v11 = vld [vmem:[%s3298_s3 + $0x190] sm:$0xff]  ;;  %v610_v12 = vld [vmem:[%s3298_s3 + $0x1a8] sm:$0xff] }
  0x20   :  { %1959 = vmatpush1.bf16.msra.mxu1 %v1958_v22  ;;  %v612_v13 = vld [vmem:[%s3298_s3 + $0x1b8] sm:$0xff]  ;;  %v1990_v15 = vpack.c.bf16 %v607_v11, %v605_v10  ;;  %v609_v17 = vld [vmem:[%s3298_s3 + $0x1a0] sm:$0xff]  ;;  %v611_v18 = vld [vmem:[%s3298_s3 + $0x1b0] sm:$0xff]  ;;  %v99_v2 = vshrl.u32 %v98_v62, 7 }
  0x21   :  { %1939 = vmatpush1.bf16.msra.mxu0 %v1938_v48  ;;  %1961 = vmatprep.subr.bf16.mxu1 %v1960_v23  ;;  %v596_v48 = vld [vmem:[%s3298_s3 + $0x138] sm:$0xff]  ;;  %v1992_v16 = vpack.c.bf16 %v612_v13, %v610_v12  ;;  %v45_v19 = vld [vmem:[%s3297_s0 + $0x68] sm:$0xff]  ;;  %v1994_v20 = vpack.c.bf16 %v611_v18, %v609_v17  ;;  %v48_v23 = vld [vmem:[%s3297_s0 + $0x80] sm:$0xff] }
  0x22   :  { %v1976_v51 = vpack.c.bf16 %v596_v48, %v594_v47  ;;  %v47_v22 = vld [vmem:[%s3297_s0 + $0x78] sm:$0xff]  ;;  %v49_v24 = vld [vmem:[%s3297_s0 + $0x88] sm:$0xff]  ;;  %v50_v25 = vld [vmem:[%s3297_s0 + $0x90] sm:$0xff] }
  0x23   :  { %v51_v26 = vld [vmem:[%s3297_s0 + $0x98] sm:$0xff]  ;;  %v52_v27 = vld [vmem:[%s3297_s0 + $0xa0] sm:$0xff]  ;;  %v615_v33 = vld [vmem:[%s3298_s3 + $0x1d0] sm:$0xff] }
  0x24   :  { %173 = vmatmul.mubr.f32.vlgmr.msra.gmra.mrb[0].mxu0 %v32_v49  ;;  %1963 = vmatpush1.bf16.msra.mxu1 %v1962_v29  ;;  %v40_v49 = vld [vmem:[%s3297_s0 + $0x40] sm:$0xff]  ;;  %v616_v29 = vld [vmem:[%s3298_s3 + $0x1d8] sm:$0xff]  ;;  %v619_v40 = vld [vmem:[%s3298_s3 + $0x1f0] sm:$0xff] }
  0x25   :  { %178 = vmatprep.mubr.f32.mxu0 %v2150_v3  ;;  %1965 = vmatprep.subr.bf16.mxu1 %v1964_v30  ;;  %v53_v30 = vld [vmem:[%s3297_s0 + $0xa8] sm:$0xff]  ;;  %v613_v32 = vld [vmem:[%s3298_s3 + $0x1c0] sm:$0xff]  ;;  %v58_v45 = vld [vmem:[%s3297_s0 + $0xd0] sm:$0xff] }
  0x26   :  { %v1998_v34 = vpack.c.bf16 %v615_v33, %v613_v32  ;;  %v617_v39 = vld [vmem:[%s3298_s3 + $0x1e0] sm:$0xff]  ;;  %v59_v46 = vld [vmem:[%s3297_s0 + $0xd8] sm:$0xff]  ;;  %v61_v48 = vld [vmem:[%s3297_s0 + $0xe8] sm:$0xff] }
  0x27   :  { %v2002_v41 = vpack.c.bf16 %v619_v40, %v617_v39  ;;  %v60_v47 = vld [vmem:[%s3297_s0 + $0xe0] sm:$0xff]  ;;  %v1085_v52 = vld [vmem:[%s3299_s5 + $0x18] sm:$0xff]  ;;  %v1088_v60 = vld [vmem:[%s3299_s5 + $0x30] sm:$0xff] }
  0x28   :  { %179 = vmatmul.mubr.f32.gmra.mrb[2].mxu0 %v33_v63  ;;  %1967 = vmatpush1.bf16.msra.mxu1 %v1966_v36  ;;  %v42_v63 = vld [vmem:[%s3297_s0 + $0x50] sm:$0xff]  ;;  %v620_v36 = vld [vmem:[%s3298_s3 + $0x1f8] sm:$0xff]  ;;  %v1082_v53 = vld [vmem:[%s3299_s5] sm:$0xff] }
  0x29   :  { %184 = vmatprep.mubr.f32.mxu0 %v2150_v3  ;;  %1969 = vmatprep.subr.bf16.mxu1 %v1968_v37  ;;  %v54_v37 = vld [vmem:[%s3297_s0 + $0xb0] sm:$0xff]  ;;  %v1095_v10 = vld [vmem:[%s3299_s5 + $0x68] sm:$0xff]  ;;  %v1097_v11 = vld [vmem:[%s3299_s5 + $0x78] sm:$0xff] }
  0x2a   :  { %v1092_v5 = vld [vmem:[%s3299_s5 + $0x50] sm:$0xff]  ;;  %v1094_v12 = vld [vmem:[%s3299_s5 + $0x60] sm:$0xff]  ;;  %v1105_v32 = vld [vmem:[%s3299_s5 + $0xb8] sm:$0xff] }
  0x2c   :  { %185 = vmatmul.mubr.f32.gmra.mrb[4].mxu0 %v34_v7  ;;  %1971 = vmatpush1.bf16.msra.mxu1 %v1970_v43  ;;  %v43_v7 = vld [vmem:[%s3297_s0 + $0x58] sm:$0xff]  ;;  %v56_v43 = vld [vmem:[%s3297_s0 + $0xc0] sm:$0xff] }
  0x2d   :  { %190 = vmatprep.mubr.f32.mxu0 %v2150_v3  ;;  %1973 = vmatprep.subr.bf16.mxu1 %v1972_v44  ;;  %v57_v44 = vld [vmem:[%s3297_s0 + $0xc8] sm:$0xff] }
  0x30   :  { %191 = vmatmul.mubr.f32.gmra.mrb[6].mxu0 %v35_v14  ;;  %1975 = vmatpush1.bf16.msra.mxu1 %v1974_v50  ;;  %v44_v14 = vld [vmem:[%s3297_s0 + $0x60] sm:$0xff]  ;;  %v63_v50 = vld [vmem:[%s3297_s0 + $0xf8] sm:$0xff] }
  0x31   :  { %196 = vmatprep.mubr.f32.mxu0 %v2150_v3  ;;  %1977 = vmatprep.subr.bf16.mxu1 %v1976_v51  ;;  %v1083_v51 = vld [vmem:[%s3299_s5 + $0x8] sm:$0xff] }
  0x32   :  { %v2004_v54 = vpack.c.bf16 %v1085_v52, %v1083_v51  ;;  %v1113_v51 = vld [vmem:[%s3299_s5 + $0xf8] sm:$0xff] }
  0x34   :  { %197 = vmatmul.mubr.f32.gmra.mrb[8].mxu0 %v36_v21  ;;  %1979 = vmatpush1.bf16.msra.mxu1 %v1978_v57  ;;  %v46_v21 = vld [vmem:[%s3297_s0 + $0x70] sm:$0xff]  ;;  %v1089_v57 = vld [vmem:[%s3299_s5 + $0x38] sm:$0xff] }
  0x35   :  { %202 = vmatprep.mubr.f32.mxu0 %v2150_v3  ;;  %1981 = vmatprep.subr.bf16.mxu1 %v1980_v58  ;;  %v1086_v58 = vld [vmem:[%s3299_s5 + $0x20] sm:$0xff] }
  0x36   :  { %2005 = vmatprep.subr.bf16.mxu0 %v2004_v54  ;;  %v2010_v61 = vpack.c.bf16 %v1088_v60, %v1086_v58  ;;  %v1112_v60 = vld [vmem:[%s3299_s5 + $0xf0] sm:$0xff] }
  0x38   :  { %203 = vmatmul.mubr.f32.gmra.mrb[10].mxu0 %v37_v28  ;;  %1983 = vmatpush1.bf16.msra.mxu1 %v1982_v0  ;;  %v614_v28 = vld [vmem:[%s3298_s3 + $0x1c8] sm:$0xff]  ;;  %v1093_v0 = vld [vmem:[%s3299_s5 + $0x58] sm:$0xff] }
  0x39   :  { %208 = vmatprep.mubr.f32.mxu0 %v2150_v3  ;;  %1985 = vmatprep.subr.bf16.mxu1 %v1984_v1  ;;  %v1996_v31 = vpack.c.bf16 %v616_v29, %v614_v28  ;;  %v1090_v1 = vld [vmem:[%s3299_s5 + $0x40] sm:$0xff] }
  0x3a   :  { %v2014_v6 = vpack.c.bf16 %v1092_v5, %v1090_v1 }
  0x3c   :  { %209 = vmatmul.mubr.f32.gmra.mrb[12].mxu0 %v38_v35  ;;  %1987 = vmatpush1.bf16.msra.mxu1 %v1986_v8  ;;  %v618_v35 = vld [vmem:[%s3298_s3 + $0x1e8] sm:$0xff]  ;;  %v96_v8 = vld [vmem:[%s3300_s2] sm:$0x3] }
  0x3d   :  { %214 = vmatprep.mubr.f32.mxu0 %v2150_v3  ;;  %1989 = vmatprep.subr.bf16.mxu1 %v1988_v9  ;;  %v2000_v38 = vpack.c.bf16 %v620_v36, %v618_v35  ;;  %v2659_v9 = vsub.s32 1, %v99_v2  ;;  %v1102_v36 = vld [vmem:[%s3299_s5 + $0xa0] sm:$0xff] }
  0x40   :  { %215 = vmatmul.mubr.f32.gmra.mrb[14].mxu0 %v39_v42  ;;  %1991 = vmatpush1.bf16.msra.mxu1 %v1990_v15  ;;  %v55_v42 = vld [vmem:[%s3297_s0 + $0xb8] sm:$0xff]  ;;  %v1096_v15 = vld [vmem:[%s3299_s5 + $0x70] sm:$0xff] }
  0x41   :  { %220 = vmatprep.mubr.f32.mxu0 %v2150_v3  ;;  %1993 = vmatprep.subr.bf16.mxu1 %v1992_v16  ;;  %v2677_v16 = vrot.slane %v96_v8, %v2659_v9  ;;  %v2018_v17 = vpack.c.bf16 %v1096_v15, %v1094_v12  ;;  %v1114_v12 = vld [vmem:[%s3299_s5 + $0x100] sm:$0xff]  ;;  %v1119_v15 = vld [vmem:[%s3299_s5 + $0x128] sm:$0xff] }
  0x44   :  { %221 = vmatmul.mubr.f32.gmra.mrb[16].mxu0 %v40_v49  ;;  %1995 = vmatpush1.bf16.msra.mxu1 %v1994_v20  ;;  %v62_v49 = vld [vmem:[%s3297_s0 + $0xf0] sm:$0xff]  ;;  %v1101_v20 = vld [vmem:[%s3299_s5 + $0x98] sm:$0xff] }
  0x45   :  { %226 = vmatprep.mubr.f32.mxu0 %v2150_v3  ;;  %1997 = vmatprep.subr.bf16.mxu1 %v1996_v31  ;;  %v1103_v31 = vld [vmem:[%s3299_s5 + $0xa8] sm:$0xff] }
  0x46   :  { %v2024_v35 = vpack.c.bf16 %v1105_v32, %v1103_v31 }
  0x48   :  { %227 = vmatmul.mubr.f32.gmra.mrb[18].mxu0 %v41_v56  ;;  %1999 = vmatpush1.bf16.msra.mxu1 %v1998_v34  ;;  %v1087_v56 = vld [vmem:[%s3299_s5 + $0x28] sm:$0xff] }
  0x49   :  { %232 = vmatprep.mubr.f32.mxu0 %v2150_v3  ;;  %2001 = vmatprep.subr.bf16.mxu1 %v2000_v38  ;;  %v2008_v59 = vpack.c.bf16 %v1089_v57, %v1087_v56  ;;  %v1107_v38 = vld [vmem:[%s3299_s5 + $0xc8] sm:$0xff] }
  0x4c   :  { %233 = vmatmul.mubr.f32.gmra.mrb[20].mxu0 %v42_v63  ;;  %2003 = vmatpush1.bf16.msra.mxu1 %v2002_v41  ;;  %v1091_v63 = vld [vmem:[%s3299_s5 + $0x48] sm:$0xff] }
  0x4d   :  { %238 = vmatprep.mubr.f32.mxu0 %v2150_v3  ;;  %v2012_v4 = vpack.c.bf16 %v1093_v0, %v1091_v63  ;;  %v1117_v0 = vld [vmem:[%s3299_s5 + $0x118] sm:$0xff] }
  0x50   :  { %239 = vmatmul.mubr.f32.gmra.mrb[22].mxu0 %v43_v7  ;;  %v2654_v7 = vsub.s32 0, %v99_v2 }
  0x51   :  { %244 = vmatprep.mubr.f32.mxu0 %v2150_v3 }
  0x52   :  { %v2671_v13 = vrot.slane %v96_v8, %v2654_v7 }
  0x54   :  { %245 = vmatmul.mubr.f32.gmra.mrb[24].mxu0 %v44_v14  ;;  %v2016_v14 = vpack.c.bf16 %v1097_v11, %v1095_v10 }
  0x55   :  { %250 = vmatprep.mubr.f32.mxu0 %v2150_v3 }
  0x58   :  { %251 = vmatmul.mubr.f32.gmra.mrb[26].mxu0 %v45_v19  ;;  %v1099_v19 = vld [vmem:[%s3299_s5 + $0x88] sm:$0xff] }
  0x59   :  { %256 = vmatprep.mubr.f32.mxu0 %v2150_v3 }
  0x5c   :  { %257 = vmatmul.mubr.f32.gmra.mrb[28].mxu0 %v46_v21 }
  0x5d   :  { %262 = vmatprep.mubr.f32.mxu0 %v2150_v3 }
  0x60   :  { %263 = vmatmul.mubr.f32.gmra.mrb[30].mxu0 %v47_v22 }
  0x61   :  { %268 = vmatprep.mubr.f32.mxu0 %v2150_v3 }
  0x64   :  { %269 = vmatmul.mubr.f32.gmra.mrb[32].mxu0 %v48_v23  ;;  %v2020_v23 = vpack.c.bf16 %v1101_v20, %v1099_v19  ;;  %v1121_v19 = vld [vmem:[%s3299_s5 + $0x138] sm:$0xff] }
  0x65   :  { %274 = vmatprep.mubr.f32.mxu0 %v2150_v3 }
  0x68   :  { %275 = vmatmul.mubr.f32.gmra.mrb[34].mxu0 %v49_v24 }
  0x69   :  { %280 = vmatprep.mubr.f32.mxu0 %v2150_v3 }
  0x6c   :  { %281 = vmatmul.mubr.f32.gmra.mrb[36].mxu0 %v50_v25 }
  0x6d   :  { %286 = vmatprep.mubr.f32.mxu0 %v2150_v3 }
  0x70   :  { %287 = vmatmul.mubr.f32.gmra.mrb[38].mxu0 %v51_v26  ;;  %v1098_v26 = vld [vmem:[%s3299_s5 + $0x80] sm:$0xff] }
  0x71   :  { %292 = vmatprep.mubr.f32.mxu0 %v2150_v3 }
  0x74   :  { %293 = vmatmul.mubr.f32.gmra.mrb[40].mxu0 %v52_v27  ;;  %v1100_v27 = vld [vmem:[%s3299_s5 + $0x90] sm:$0xff] }
  0x75   :  { %298 = vmatprep.mubr.f32.mxu0 %v2150_v3 }
  0x78   :  { %299 = vmatmul.mubr.f32.gmra.mrb[42].mxu0 %v53_v30  ;;  %v2022_v30 = vpack.c.bf16 %v1100_v27, %v1098_v26  ;;  %v2040_v27 = vpack.c.bf16 %v1121_v19, %v1119_v15 }
  0x79   :  { %304 = vmatprep.mubr.f32.mxu0 %v2150_v3 }
  0x7c   :  { %305 = vmatmul.mubr.f32.gmra.mrb[44].mxu0 %v54_v37  ;;  %v1104_v37 = vld [vmem:[%s3299_s5 + $0xb0] sm:$0xff] }
  0x7d   :  { %310 = vmatprep.mubr.f32.mxu0 %v2150_v3  ;;  %v2026_v41 = vpack.c.bf16 %v1104_v37, %v1102_v36 }
  0x80   :  { %311 = vmatmul.mubr.f32.gmra.mrb[46].mxu0 %v55_v42  ;;  %v1109_v42 = vld [vmem:[%s3299_s5 + $0xd8] sm:$0xff] }
  0x81   :  { %316 = vmatprep.mubr.f32.mxu0 %v2150_v3 }
  0x84   :  { %317 = vmatmul.mubr.f32.gmra.mrb[48].mxu0 %v56_v43 }
  0x85   :  { %322 = vmatprep.mubr.f32.mxu0 %v2150_v3 }
  0x88   :  { %323 = vmatmul.mubr.f32.gmra.mrb[50].mxu0 %v57_v44 }
  0x89   :  { %328 = vmatprep.mubr.f32.mxu0 %v2150_v3 }
  0x8c   :  { %329 = vmatmul.mubr.f32.gmra.mrb[52].mxu0 %v58_v45  ;;  %v2028_v45 = vpack.c.bf16 %v1109_v42, %v1107_v38  ;;  %v1122_v42 = vld [vmem:[%s3299_s5 + $0x140] sm:$0xff] }
  0x8d   :  { %334 = vmatprep.mubr.f32.mxu0 %v2150_v3 }
  0x90   :  { %335 = vmatmul.mubr.f32.gmra.mrb[54].mxu0 %v59_v46  ;;  %v1106_v46 = vld [vmem:[%s3299_s5 + $0xc0] sm:$0xff] }
  0x91   :  { %340 = vmatprep.mubr.f32.mxu0 %v2150_v3 }
  0x94   :  { %341 = vmatmul.mubr.f32.gmra.mrb[56].mxu0 %v60_v47  ;;  %v1108_v47 = vld [vmem:[%s3299_s5 + $0xd0] sm:$0xff] }
  0x95   :  { %346 = vmatprep.mubr.f32.mxu0 %v2150_v3 }
  0x98   :  { %347 = vmatmul.mubr.f32.gmra.mrb[58].mxu0 %v61_v48 }
  0x99   :  { %352 = vmatprep.mubr.f32.mxu0 %v2150_v3 }
  0x9c   :  { %353 = vmatmul.mubr.f32.gmra.mrb[60].mxu0 %v62_v49 }
  0x9d   :  { %358 = vmatprep.mubr.f32.mxu0 %v2150_v3  ;;  %v1084_v3 = vld [vmem:[%s3299_s5 + $0x10] sm:$0xff] }
  0x9e   :  { %v2006_v55 = vpack.c.bf16 %v1084_v3, %v1082_v53 }
  0xa0   :  { %359 = vmatmul.mubr.f32.gmra.mrb[62].mxu0 %v63_v50  ;;  %v1111_v50 = vld [vmem:[%s3299_s5 + $0xe8] sm:$0xff] }
  0xa1   :  { %2007 = vmatpush1.bf16.msra.mxu0 %v2006_v55  ;;  %v2030_v55 = vpack.c.bf16 %v1108_v47, %v1106_v46  ;;  %v2032_v58 = vpack.c.bf16 %v1113_v51, %v1111_v50  ;;  %v1129_v47 = vld [vmem:[%s3299_s5 + $0x178] sm:$0xff] }
  0xa2   :  { %2009 = vmatprep.subr.bf16.mxu0 %v2008_v59  ;;  %v1110_v59 = vld [vmem:[%s3299_s5 + $0xe0] sm:$0xff] }
  0xa5   :  { %2011 = vmatpush1.bf16.msra.mxu0 %v2010_v61  ;;  %v1115_v61 = vld [vmem:[%s3299_s5 + $0x108] sm:$0xff] }
  0xa6   :  { %2013 = vmatprep.subr.bf16.mxu0 %v2012_v4  ;;  %v2036_v11 = vpack.c.bf16 %v1117_v0, %v1115_v61 }
  0xa9   :  { %2015 = vmatpush1.bf16.msra.mxu0 %v2014_v6  ;;  %v2034_v6 = vpack.c.bf16 %v1112_v60, %v1110_v59  ;;  %v1133_v60 = vld [vmem:[%s3299_s5 + $0x198] sm:$0xff] }
  0xaa   :  { %2017 = vmatprep.subr.bf16.mxu0 %v2016_v14  ;;  %v1116_v14 = vld [vmem:[%s3299_s5 + $0x110] sm:$0xff] }
  0xad   :  { %2019 = vmatpush1.bf16.msra.mxu0 %v2018_v17 }
  0xae   :  { %2021 = vmatprep.subr.bf16.mxu0 %v2020_v23 }
  0xb1   :  { %2023 = vmatpush1.bf16.msra.mxu0 %v2022_v30  ;;  %v1123_v30 = vld [vmem:[%s3299_s5 + $0x148] sm:$0xff] }
  0xb2   :  { %2025 = vmatprep.subr.bf16.mxu0 %v2024_v35 }
  0xb5   :  { %2027 = vmatpush1.bf16.msra.mxu0 %v2026_v41 }
  0xb6   :  { %2029 = vmatprep.subr.bf16.mxu0 %v2028_v45 }
  0xb9   :  { %2031 = vmatpush1.bf16.msra.mxu0 %v2030_v55  ;;  %v1126_v55 = vld [vmem:[%s3299_s5 + $0x160] sm:$0xff] }
  0xba   :  { %2033 = vmatprep.subr.bf16.mxu0 %v2032_v58 }
  0xbd   :  { %2035 = vmatpush1.bf16.msra.mxu0 %v2034_v6  ;;  %v1130_v6 = vld [vmem:[%s3299_s5 + $0x180] sm:$0xff] }
  0xbe   :  { %2037 = vmatprep.subr.bf16.mxu0 %v2036_v11 }
  0xf7   :  { %v174_v18 = vpop.f32.mrb[0].mxu0 }
  0xf8   :  { %v175_v21 = vadd.f32 %v174_v18, %v2671_v13  ;;  %v176_v22 = vpop.f32.mrb[1].mxu0 }
  0xf9   :  { %v177_v24 = vadd.f32 %v176_v22, %v2677_v16 }
  0xfa   :  { %v429_v25 = vmul.f32 0.01, %v175_v21  ;;  %vm365_vm0 = vcmp.gt.f32.partialorder %v175_v21, 0.0 }
  0xfb   :  { %v180_v28 = vpop.f32.mrb[2].mxu0  ;;  %vm366_vm1 = vcmp.gt.f32.partialorder %v177_v24, 0.0  ;;  %v430_v29 = vmul.f32 0.01, %v177_v24 }
  0xfc   :  { %v181_v33 = vadd.f32 %v180_v28, %v2671_v13  ;;  %v182_v34 = vpop.f32.mrb[3].mxu0  ;;  %v493_v44 = vsel %vm365_vm0, %v175_v21, %v429_v25  ;;  %v1118_v28 = vld [vmem:[%s3299_s5 + $0x120] sm:$0xff] }
  0xfd   :  { %v183_v39 = vadd.f32 %v182_v34, %v2677_v16  ;;  %v494_v40 = vsel %vm366_vm1, %v177_v24, %v430_v29  ;;  %v2038_v24 = vpack.c.bf16 %v1116_v14, %v1114_v12  ;;  %v1120_v29 = vld [vmem:[%s3299_s5 + $0x130] sm:$0xff]  ;;  %v1137_v14 = vld [vmem:[%s3299_s5 + $0x1b8] sm:$0xff] }
  0xfe   :  { %v431_v43 = vmul.f32 0.01, %v181_v33  ;;  %697 = vmatprep.mubr.f32.mxu1 %v494_v40  ;;  %vm367_vm2 = vcmp.gt.f32.partialorder %v181_v33, 0.0  ;;  %v2042_v38 = vpack.c.bf16 %v1120_v29, %v1118_v28  ;;  %v1141_v29 = vld [vmem:[%s3299_s5 + $0x1d8] sm:$0xff] }
  0xff   :  { %v432_v48 = vmul.f32 0.01, %v183_v39  ;;  %v186_v49 = vpop.f32.mrb[4].mxu0  ;;  %698 = vmatmul.mubr.f32.vlgmr.msra.gmra.mrb[0].mxu1 %v493_v44  ;;  %vm368_vm3 = vcmp.gt.f32.partialorder %v183_v39, 0.0  ;;  %2039 = vmatpush1.bf16.msra.mxu0 %v2038_v24  ;;  %v1127_v44 = vld [vmem:[%s3299_s5 + $0x168] sm:$0xff]  ;;  %v1134_v24 = vld [vmem:[%s3299_s5 + $0x1a0] sm:$0xff] }
 0x100   :  { %v187_v52 = vadd.f32 %v186_v49, %v2671_v13  ;;  %v188_v53 = vpop.f32.mrb[5].mxu0  ;;  %v495_v57 = vsel %vm367_vm2, %v181_v33, %v431_v43  ;;  %v1125_v33 = vld [vmem:[%s3299_s5 + $0x158] sm:$0xff]  ;;  %2041 = vmatprep.subr.bf16.mxu0 %v2040_v27  ;;  %v1124_v43 = vld [vmem:[%s3299_s5 + $0x150] sm:$0xff] }
 0x101   :  { %v189_v54 = vadd.f32 %v188_v53, %v2677_v16  ;;  %v496_v3 = vsel %vm368_vm3, %v183_v39, %v432_v48  ;;  %v2044_v41 = vpack.c.bf16 %v1125_v33, %v1123_v30 }
 0x102   :  { %v433_v56 = vmul.f32 0.01, %v187_v52  ;;  %703 = vmatprep.mubr.f32.mxu1 %v496_v3  ;;  %vm369_vm5 = vcmp.gt.f32.partialorder %v187_v52, 0.0  ;;  %v2048_v3 = vpack.c.bf16 %v1129_v47, %v1127_v44 }
 0x103   :  { %v434_v62 = vmul.f32 0.01, %v189_v54  ;;  %v192_v63 = vpop.f32.mrb[6].mxu0  ;;  %704 = vmatmul.mubr.f32.gmra.mrb[2].mxu1 %v495_v57  ;;  %vm370_vm4 = vcmp.gt.f32.partialorder %v189_v54, 0.0  ;;  %2043 = vmatpush1.bf16.msra.mxu0 %v2042_v38  ;;  %v1131_v57 = vld [vmem:[%s3299_s5 + $0x188] sm:$0xff]  ;;  %v1138_v38 = vld [vmem:[%s3299_s5 + $0x1c0] sm:$0xff] }
 0x104   :  { %v193_v1 = vadd.f32 %v192_v63, %v2671_v13  ;;  %v194_v2 = vpop.f32.mrb[7].mxu0  ;;  %v497_v10 = vsel %vm369_vm5, %v187_v52, %v433_v56  ;;  %v2046_v52 = vpack.c.bf16 %v1124_v43, %v1122_v42  ;;  %2045 = vmatprep.subr.bf16.mxu0 %v2044_v41  ;;  %v1128_v56 = vld [vmem:[%s3299_s5 + $0x170] sm:$0xff]  ;;  %v1145_v43 = vld [vmem:[%s3299_s5 + $0x1f8] sm:$0xff] }
 0x105   :  { %v195_v4 = vadd.f32 %v194_v2, %v2677_v16  ;;  %v498_v5 = vsel %vm370_vm4, %v189_v54, %v434_v62 }
 0x106   :  { %v435_v8 = vmul.f32 0.01, %v193_v1  ;;  %709 = vmatprep.mubr.f32.mxu1 %v498_v5  ;;  %vm371_vm7 = vcmp.gt.f32.partialorder %v193_v1, 0.0  ;;  %v2052_v5 = vpack.c.bf16 %v1133_v60, %v1131_v57 }
 0x107   :  { %v436_v17 = vmul.f32 0.01, %v195_v4  ;;  %v198_v18 = vpop.f32.mrb[8].mxu0  ;;  %710 = vmatmul.mubr.f32.gmra.mrb[4].mxu1 %v497_v10  ;;  %vm372_vm6 = vcmp.gt.f32.partialorder %v195_v4, 0.0  ;;  %2047 = vmatpush1.bf16.msra.mxu0 %v2046_v52  ;;  %v1135_v10 = vld [vmem:[%s3299_s5 + $0x1a8] sm:$0xff] }
 0x108   :  { %v199_v20 = vadd.f32 %v198_v18, %v2671_v13  ;;  %v200_v21 = vpop.f32.mrb[9].mxu0  ;;  %v499_v26 = vsel %vm371_vm7, %v193_v1, %v435_v8  ;;  %v2050_v1 = vpack.c.bf16 %v1128_v56, %v1126_v55  ;;  %2049 = vmatprep.subr.bf16.mxu0 %v2048_v3  ;;  %v1132_v8 = vld [vmem:[%s3299_s5 + $0x190] sm:$0xff] }
 0x109   :  { %v201_v22 = vadd.f32 %v200_v21, %v2677_v16  ;;  %v500_v23 = vsel %vm372_vm6, %v195_v4, %v436_v17 }
 0x10a   :  { %v437_v25 = vmul.f32 0.01, %v199_v20  ;;  %715 = vmatprep.mubr.f32.mxu1 %v500_v23  ;;  %vm373_vm9 = vcmp.gt.f32.partialorder %v199_v20, 0.0  ;;  %v2056_v23 = vpack.c.bf16 %v1137_v14, %v1135_v10 }
 0x10b   :  { %v438_v31 = vmul.f32 0.01, %v201_v22  ;;  %v204_v32 = vpop.f32.mrb[10].mxu0  ;;  %716 = vmatmul.mubr.f32.gmra.mrb[6].mxu1 %v499_v26  ;;  %vm374_vm8 = vcmp.gt.f32.partialorder %v201_v22, 0.0  ;;  %2051 = vmatpush1.bf16.msra.mxu0 %v2050_v1  ;;  %v1139_v26 = vld [vmem:[%s3299_s5 + $0x1c8] sm:$0xff] }
 0x10c   :  { %v205_v34 = vadd.f32 %v204_v32, %v2671_v13  ;;  %v206_v35 = vpop.f32.mrb[11].mxu0  ;;  %v501_v40 = vsel %vm373_vm9, %v199_v20, %v437_v25  ;;  %v2054_v20 = vpack.c.bf16 %v1132_v8, %v1130_v6  ;;  %2053 = vmatprep.subr.bf16.mxu0 %v2052_v5  ;;  %v1136_v25 = vld [vmem:[%s3299_s5 + $0x1b0] sm:$0xff] }
 0x10d   :  { %v207_v36 = vadd.f32 %v206_v35, %v2677_v16  ;;  %v502_v37 = vsel %vm374_vm8, %v201_v22, %v438_v31 }
 0x10e   :  { %v439_v39 = vmul.f32 0.01, %v205_v34  ;;  %721 = vmatprep.mubr.f32.mxu1 %v502_v37  ;;  %vm375_vm11 = vcmp.gt.f32.partialorder %v205_v34, 0.0  ;;  %v2060_v37 = vpack.c.bf16 %v1141_v29, %v1139_v26 }
 0x10f   :  { %v440_v45 = vmul.f32 0.01, %v207_v36  ;;  %v210_v46 = vpop.f32.mrb[12].mxu0  ;;  %722 = vmatmul.mubr.f32.gmra.mrb[8].mxu1 %v501_v40  ;;  %vm376_vm10 = vcmp.gt.f32.partialorder %v207_v36, 0.0  ;;  %2055 = vmatpush1.bf16.msra.mxu0 %v2054_v20  ;;  %v1143_v40 = vld [vmem:[%s3299_s5 + $0x1e8] sm:$0xff] }
 0x110   :  { %v211_v48 = vadd.f32 %v210_v46, %v2671_v13  ;;  %v212_v49 = vpop.f32.mrb[13].mxu0  ;;  %v503_v54 = vsel %vm375_vm11, %v205_v34, %v439_v39  ;;  %v2058_v34 = vpack.c.bf16 %v1136_v25, %v1134_v24  ;;  %2057 = vmatprep.subr.bf16.mxu0 %v2056_v23  ;;  %v1140_v39 = vld [vmem:[%s3299_s5 + $0x1d0] sm:$0xff] }
 0x111   :  { %v213_v50 = vadd.f32 %v212_v49, %v2677_v16  ;;  %v504_v51 = vsel %vm376_vm10, %v207_v36, %v440_v45 }
 0x112   :  { %v441_v53 = vmul.f32 0.01, %v211_v48  ;;  %727 = vmatprep.mubr.f32.mxu1 %v504_v51  ;;  %vm377_vm13 = vcmp.gt.f32.partialorder %v211_v48, 0.0  ;;  %v2064_v51 = vpack.c.bf16 %v1145_v43, %v1143_v40 }
 0x113   :  { %v442_v58 = vmul.f32 0.01, %v213_v50  ;;  %v216_v59 = vpop.f32.mrb[14].mxu0  ;;  %728 = vmatmul.mubr.f32.gmra.mrb[10].mxu1 %v503_v54  ;;  %vm378_vm12 = vcmp.gt.f32.partialorder %v213_v50, 0.0  ;;  %2059 = vmatpush1.bf16.msra.mxu0 %v2058_v34 }
 0x114   :  { %v217_v61 = vadd.f32 %v216_v59, %v2671_v13  ;;  %v218_v62 = vpop.f32.mrb[15].mxu0  ;;  %v505_v4 = vsel %vm377_vm13, %v211_v48, %v441_v53  ;;  %v2062_v48 = vpack.c.bf16 %v1140_v39, %v1138_v38  ;;  %2061 = vmatprep.subr.bf16.mxu0 %v2060_v37 }
 0x115   :  { %v219_v63 = vadd.f32 %v218_v62, %v2677_v16  ;;  %v506_v0 = vsel %vm378_vm12, %v213_v50, %v442_v58 }
 0x116   :  { %v443_v2 = vmul.f32 0.01, %v217_v61  ;;  %733 = vmatprep.mubr.f32.mxu1 %v506_v0  ;;  %vm379_vm15 = vcmp.gt.f32.partialorder %v217_v61, 0.0 }
 0x117   :  { %v444_v11 = vmul.f32 0.01, %v219_v63  ;;  %v222_v12 = vpop.f32.mrb[16].mxu0  ;;  %734 = vmatmul.mubr.f32.gmra.mrb[12].mxu1 %v505_v4  ;;  %vm380_vm14 = vcmp.gt.f32.partialorder %v219_v63, 0.0  ;;  %2063 = vmatpush1.bf16.msra.mxu0 %v2062_v48 }
 0x118   :  { %v223_v15 = vadd.f32 %v222_v12, %v2671_v13  ;;  %v224_v17 = vpop.f32.mrb[17].mxu0  ;;  %v507_v22 = vsel %vm379_vm15, %v217_v61, %v443_v2  ;;  %2065 = vmatprep.subr.bf16.mxu0 %v2064_v51 }
 0x119   :  { %v225_v18 = vadd.f32 %v224_v17, %v2677_v16  ;;  %v508_v19 = vsel %vm380_vm14, %v219_v63, %v444_v11 }
 0x11a   :  { %v445_v21 = vmul.f32 0.01, %v223_v15  ;;  %739 = vmatprep.mubr.f32.mxu1 %v508_v19  ;;  %vm381_vm1 = vcmp.gt.f32.partialorder %v223_v15, 0.0 }
 0x11b   :  { %v446_v27 = vmul.f32 0.01, %v225_v18  ;;  %v228_v28 = vpop.f32.mrb[18].mxu0  ;;  %740 = vmatmul.mubr.f32.gmra.mrb[14].mxu1 %v507_v22  ;;  %vm382_vm0 = vcmp.gt.f32.partialorder %v225_v18, 0.0 }
 0x11c   :  { %v229_v30 = vadd.f32 %v228_v28, %v2671_v13  ;;  %v230_v31 = vpop.f32.mrb[19].mxu0  ;;  %v509_v36 = vsel %vm381_vm1, %v223_v15, %v445_v21 }
 0x11d   :  { %v231_v32 = vadd.f32 %v230_v31, %v2677_v16  ;;  %v510_v33 = vsel %vm382_vm0, %v225_v18, %v446_v27 }
 0x11e   :  { %v447_v35 = vmul.f32 0.01, %v229_v30  ;;  %745 = vmatprep.mubr.f32.mxu1 %v510_v33  ;;  %vm383_vm3 = vcmp.gt.f32.partialorder %v229_v30, 0.0 }
 0x11f   :  { %v448_v41 = vmul.f32 0.01, %v231_v32  ;;  %v234_v42 = vpop.f32.mrb[20].mxu0  ;;  %746 = vmatmul.mubr.f32.gmra.mrb[16].mxu1 %v509_v36  ;;  %vm384_vm2 = vcmp.gt.f32.partialorder %v231_v32, 0.0 }
 0x120   :  { %v235_v44 = vadd.f32 %v234_v42, %v2671_v13  ;;  %v236_v45 = vpop.f32.mrb[21].mxu0  ;;  %v511_v50 = vsel %vm383_vm3, %v229_v30, %v447_v35 }
 0x121   :  { %v237_v46 = vadd.f32 %v236_v45, %v2677_v16  ;;  %v512_v47 = vsel %vm384_vm2, %v231_v32, %v448_v41 }
 0x122   :  { %v449_v49 = vmul.f32 0.01, %v235_v44  ;;  %751 = vmatprep.mubr.f32.mxu1 %v512_v47  ;;  %vm385_vm5 = vcmp.gt.f32.partialorder %v235_v44, 0.0 }
 0x123   :  { %v450_v52 = vmul.f32 0.01, %v237_v46  ;;  %v240_v53 = vpop.f32.mrb[22].mxu0  ;;  %752 = vmatmul.mubr.f32.gmra.mrb[18].mxu1 %v511_v50  ;;  %vm386_vm4 = vcmp.gt.f32.partialorder %v237_v46, 0.0 }
 0x124   :  { %v241_v54 = vadd.f32 %v240_v53, %v2671_v13  ;;  %v242_v3 = vpop.f32.mrb[23].mxu0  ;;  %v513_v58 = vsel %vm385_vm5, %v235_v44, %v449_v49 }
 0x125   :  { %v243_v55 = vadd.f32 %v242_v3, %v2677_v16  ;;  %v514_v56 = vsel %vm386_vm4, %v237_v46, %v450_v52 }
 0x126   :  { %v451_v57 = vmul.f32 0.01, %v241_v54  ;;  %757 = vmatprep.mubr.f32.mxu1 %v514_v56  ;;  %vm387_vm7 = vcmp.gt.f32.partialorder %v241_v54, 0.0 }
 0x127   :  { %v452_v59 = vmul.f32 0.01, %v243_v55  ;;  %v246_v60 = vpop.f32.mrb[24].mxu0  ;;  %758 = vmatmul.mubr.f32.gmra.mrb[20].mxu1 %v513_v58  ;;  %vm388_vm6 = vcmp.gt.f32.partialorder %v243_v55, 0.0 }
 0x128   :  { %v247_v61 = vadd.f32 %v246_v60, %v2671_v13  ;;  %v248_v62 = vpop.f32.mrb[25].mxu0  ;;  %v515_v2 = vsel %vm387_vm7, %v241_v54, %v451_v57 }
 0x129   :  { %v249_v63 = vadd.f32 %v248_v62, %v2677_v16  ;;  %v516_v0 = vsel %vm388_vm6, %v243_v55, %v452_v59 }
 0x12a   :  { %v453_v1 = vmul.f32 0.01, %v247_v61  ;;  %763 = vmatprep.mubr.f32.mxu1 %v516_v0  ;;  %vm389_vm9 = vcmp.gt.f32.partialorder %v247_v61, 0.0 }
 0x12b   :  { %v454_v4 = vmul.f32 0.01, %v249_v63  ;;  %v252_v5 = vpop.f32.mrb[26].mxu0  ;;  %764 = vmatmul.mubr.f32.gmra.mrb[22].mxu1 %v515_v2  ;;  %vm390_vm8 = vcmp.gt.f32.partialorder %v249_v63, 0.0 }
 0x12c   :  { %v253_v6 = vadd.f32 %v252_v5, %v2671_v13  ;;  %v254_v8 = vpop.f32.mrb[27].mxu0  ;;  %v517_v14 = vsel %vm389_vm9, %v247_v61, %v453_v1 }
 0x12d   :  { %v255_v10 = vadd.f32 %v254_v8, %v2677_v16  ;;  %v518_v11 = vsel %vm390_vm8, %v249_v63, %v454_v4 }
 0x12e   :  { %v455_v12 = vmul.f32 0.01, %v253_v6  ;;  %769 = vmatprep.mubr.f32.mxu1 %v518_v11  ;;  %vm391_vm11 = vcmp.gt.f32.partialorder %v253_v6, 0.0 }
 0x12f   :  { %v456_v15 = vmul.f32 0.01, %v255_v10  ;;  %v258_v17 = vpop.f32.mrb[28].mxu0  ;;  %770 = vmatmul.mubr.f32.gmra.mrb[24].mxu1 %v517_v14  ;;  %vm392_vm10 = vcmp.gt.f32.partialorder %v255_v10, 0.0 }
 0x130   :  { %v259_v18 = vadd.f32 %v258_v17, %v2671_v13  ;;  %v260_v19 = vpop.f32.mrb[29].mxu0  ;;  %v519_v23 = vsel %vm391_vm11, %v253_v6, %v455_v12 }
 0x131   :  { %v261_v20 = vadd.f32 %v260_v19, %v2677_v16  ;;  %v520_v21 = vsel %vm392_vm10, %v255_v10, %v456_v15 }
 0x132   :  { %v457_v22 = vmul.f32 0.01, %v259_v18  ;;  %775 = vmatprep.mubr.f32.mxu1 %v520_v21  ;;  %vm393_vm13 = vcmp.gt.f32.partialorder %v259_v18, 0.0 }
 0x133   :  { %v458_v24 = vmul.f32 0.01, %v261_v20  ;;  %v264_v25 = vpop.f32.mrb[30].mxu0  ;;  %776 = vmatmul.mubr.f32.gmra.mrb[26].mxu1 %v519_v23  ;;  %vm394_vm12 = vcmp.gt.f32.partialorder %v261_v20, 0.0 }
 0x134   :  { %v265_v26 = vadd.f32 %v264_v25, %v2671_v13  ;;  %v266_v27 = vpop.f32.mrb[31].mxu0  ;;  %v521_v31 = vsel %vm393_vm13, %v259_v18, %v457_v22 }
 0x135   :  { %v267_v28 = vadd.f32 %v266_v27, %v2677_v16  ;;  %v522_v29 = vsel %vm394_vm12, %v261_v20, %v458_v24 }
 0x136   :  { %v459_v30 = vmul.f32 0.01, %v265_v26  ;;  %781 = vmatprep.mubr.f32.mxu1 %v522_v29  ;;  %vm395_vm15 = vcmp.gt.f32.partialorder %v265_v26, 0.0 }
 0x137   :  { %v460_v32 = vmul.f32 0.01, %v267_v28  ;;  %v270_v33 = vpop.f32.mrb[32].mxu0  ;;  %782 = vmatmul.mubr.f32.gmra.mrb[28].mxu1 %v521_v31  ;;  %vm396_vm14 = vcmp.gt.f32.partialorder %v267_v28, 0.0 }
 0x138   :  { %v271_v34 = vadd.f32 %v270_v33, %v2671_v13  ;;  %v272_v35 = vpop.f32.mrb[33].mxu0  ;;  %v523_v39 = vsel %vm395_vm15, %v265_v26, %v459_v30  ;;  %v1144_v33 = vld [vmem:[%s3299_s5 + $0x1f0] sm:$0xff] }
 0x139   :  { %v273_v36 = vadd.f32 %v272_v35, %v2677_v16  ;;  %v524_v37 = vsel %vm396_vm14, %v267_v28, %v460_v32  ;;  %v1142_v32 = vld [vmem:[%s3299_s5 + $0x1e0] sm:$0xff] }
 0x13a   :  { %v461_v38 = vmul.f32 0.01, %v271_v34  ;;  %787 = vmatprep.mubr.f32.mxu1 %v524_v37  ;;  %vm397_vm1 = vcmp.gt.f32.partialorder %v271_v34, 0.0 }
 0x13b   :  { %v462_v40 = vmul.f32 0.01, %v273_v36  ;;  %v276_v41 = vpop.f32.mrb[34].mxu0  ;;  %788 = vmatmul.mubr.f32.gmra.mrb[30].mxu1 %v523_v39  ;;  %vm398_vm0 = vcmp.gt.f32.partialorder %v273_v36, 0.0 }
 0x13c   :  { %v277_v42 = vadd.f32 %v276_v41, %v2671_v13  ;;  %v278_v43 = vpop.f32.mrb[35].mxu0  ;;  %v525_v47 = vsel %vm397_vm1, %v271_v34, %v461_v38 }
 0x13d   :  { %v279_v44 = vadd.f32 %v278_v43, %v2677_v16  ;;  %v526_v45 = vsel %vm398_vm0, %v273_v36, %v462_v40  ;;  %v2066_v36 = vpack.c.bf16 %v1144_v33, %v1142_v32 }
 0x13e   :  { %v463_v46 = vmul.f32 0.01, %v277_v42  ;;  %793 = vmatprep.mubr.f32.mxu1 %v526_v45  ;;  %vm399_vm3 = vcmp.gt.f32.partialorder %v277_v42, 0.0 }
 0x13f   :  { %v464_v48 = vmul.f32 0.01, %v279_v44  ;;  %v282_v49 = vpop.f32.mrb[36].mxu0  ;;  %794 = vmatmul.mubr.f32.gmra.mrb[32].mxu1 %v525_v47  ;;  %vm400_vm2 = vcmp.gt.f32.partialorder %v279_v44, 0.0  ;;  %2067 = vmatpush1.bf16.msra.mxu0 %v2066_v36 }
 0x140   :  { %v283_v50 = vadd.f32 %v282_v49, %v2671_v13  ;;  %v284_v51 = vpop.f32.mrb[37].mxu0  ;;  %v527_v3 = vsel %vm399_vm3, %v277_v42, %v463_v46 }
 0x141   :  { %v285_v52 = vadd.f32 %v284_v51, %v2677_v16  ;;  %v528_v53 = vsel %vm400_vm2, %v279_v44, %v464_v48 }
 0x142   :  { %v465_v54 = vmul.f32 0.01, %v283_v50  ;;  %799 = vmatprep.mubr.f32.mxu1 %v528_v53  ;;  %vm401_vm5 = vcmp.gt.f32.partialorder %v283_v50, 0.0 }
 0x143   :  { %v466_v55 = vmul.f32 0.01, %v285_v52  ;;  %v288_v56 = vpop.f32.mrb[38].mxu0  ;;  %800 = vmatmul.mubr.f32.gmra.mrb[34].mxu1 %v527_v3  ;;  %vm402_vm4 = vcmp.gt.f32.partialorder %v285_v52, 0.0 }
 0x144   :  { %v289_v57 = vadd.f32 %v288_v56, %v2671_v13  ;;  %v290_v58 = vpop.f32.mrb[39].mxu0  ;;  %v529_v62 = vsel %vm401_vm5, %v283_v50, %v465_v54 }
 0x145   :  { %v291_v59 = vadd.f32 %v290_v58, %v2677_v16  ;;  %v530_v60 = vsel %vm402_vm4, %v285_v52, %v466_v55 }
 0x146   :  { %v467_v61 = vmul.f32 0.01, %v289_v57  ;;  %805 = vmatprep.mubr.f32.mxu1 %v530_v60  ;;  %vm403_vm7 = vcmp.gt.f32.partialorder %v289_v57, 0.0 }
 0x147   :  { %v468_v63 = vmul.f32 0.01, %v291_v59  ;;  %v294_v0 = vpop.f32.mrb[40].mxu0  ;;  %806 = vmatmul.mubr.f32.gmra.mrb[36].mxu1 %v529_v62  ;;  %vm404_vm6 = vcmp.gt.f32.partialorder %v291_v59, 0.0 }
 0x148   :  { %v295_v1 = vadd.f32 %v294_v0, %v2671_v13  ;;  %v296_v2 = vpop.f32.mrb[41].mxu0  ;;  %v531_v8 = vsel %vm403_vm7, %v289_v57, %v467_v61 }
 0x149   :  { %v297_v4 = vadd.f32 %v296_v2, %v2677_v16  ;;  %v532_v5 = vsel %vm404_vm6, %v291_v59, %v468_v63 }
 0x14a   :  { %v469_v6 = vmul.f32 0.01, %v295_v1  ;;  %811 = vmatprep.mubr.f32.mxu1 %v532_v5  ;;  %vm405_vm9 = vcmp.gt.f32.partialorder %v295_v1, 0.0 }
 0x14b   :  { %v470_v10 = vmul.f32 0.01, %v297_v4  ;;  %v300_v11 = vpop.f32.mrb[42].mxu0  ;;  %812 = vmatmul.mubr.f32.gmra.mrb[38].mxu1 %v531_v8  ;;  %vm406_vm8 = vcmp.gt.f32.partialorder %v297_v4, 0.0 }
 0x14c   :  { %v301_v12 = vadd.f32 %v300_v11, %v2671_v13  ;;  %v302_v14 = vpop.f32.mrb[43].mxu0  ;;  %v533_v19 = vsel %vm405_vm9, %v295_v1, %v469_v6 }
 0x14d   :  { %v303_v15 = vadd.f32 %v302_v14, %v2677_v16  ;;  %v534_v17 = vsel %vm406_vm8, %v297_v4, %v470_v10 }
 0x14e   :  { %v471_v18 = vmul.f32 0.01, %v301_v12  ;;  %817 = vmatprep.mubr.f32.mxu1 %v534_v17  ;;  %vm407_vm11 = vcmp.gt.f32.partialorder %v301_v12, 0.0 }
 0x14f   :  { %v472_v20 = vmul.f32 0.01, %v303_v15  ;;  %v306_v21 = vpop.f32.mrb[44].mxu0  ;;  %818 = vmatmul.mubr.f32.gmra.mrb[40].mxu1 %v533_v19  ;;  %vm408_vm10 = vcmp.gt.f32.partialorder %v303_v15, 0.0 }
 0x150   :  { %v307_v22 = vadd.f32 %v306_v21, %v2671_v13  ;;  %v308_v23 = vpop.f32.mrb[45].mxu0  ;;  %v535_v27 = vsel %vm407_vm11, %v301_v12, %v471_v18 }
 0x151   :  { %v309_v24 = vadd.f32 %v308_v23, %v2677_v16  ;;  %v536_v25 = vsel %vm408_vm10, %v303_v15, %v472_v20 }
 0x152   :  { %v473_v26 = vmul.f32 0.01, %v307_v22  ;;  %823 = vmatprep.mubr.f32.mxu1 %v536_v25  ;;  %vm409_vm13 = vcmp.gt.f32.partialorder %v307_v22, 0.0 }
 0x153   :  { %v474_v28 = vmul.f32 0.01, %v309_v24  ;;  %v312_v29 = vpop.f32.mrb[46].mxu0  ;;  %824 = vmatmul.mubr.f32.gmra.mrb[42].mxu1 %v535_v27  ;;  %vm410_vm12 = vcmp.gt.f32.partialorder %v309_v24, 0.0 }
 0x154   :  { %v313_v30 = vadd.f32 %v312_v29, %v2671_v13  ;;  %v314_v31 = vpop.f32.mrb[47].mxu0  ;;  %v537_v38 = vsel %vm409_vm13, %v307_v22, %v473_v26 }
 0x155   :  { %v315_v34 = vadd.f32 %v314_v31, %v2677_v16  ;;  %v538_v35 = vsel %vm410_vm12, %v309_v24, %v474_v28 }
 0x156   :  { %v475_v37 = vmul.f32 0.01, %v313_v30  ;;  %829 = vmatprep.mubr.f32.mxu1 %v538_v35  ;;  %vm411_vm15 = vcmp.gt.f32.partialorder %v313_v30, 0.0 }
 0x157   :  { %v476_v39 = vmul.f32 0.01, %v315_v34  ;;  %v318_v40 = vpop.f32.mrb[48].mxu0  ;;  %830 = vmatmul.mubr.f32.gmra.mrb[44].mxu1 %v537_v38  ;;  %vm412_vm14 = vcmp.gt.f32.partialorder %v315_v34, 0.0 }
 0x158   :  { %v319_v41 = vadd.f32 %v318_v40, %v2671_v13  ;;  %v320_v42 = vpop.f32.mrb[49].mxu0  ;;  %v539_v46 = vsel %vm411_vm15, %v313_v30, %v475_v37 }
 0x159   :  { %v321_v43 = vadd.f32 %v320_v42, %v2677_v16  ;;  %v540_v44 = vsel %vm412_vm14, %v315_v34, %v476_v39 }
 0x15a   :  { %v477_v45 = vmul.f32 0.01, %v319_v41  ;;  %835 = vmatprep.mubr.f32.mxu1 %v540_v44  ;;  %vm413_vm1 = vcmp.gt.f32.partialorder %v319_v41, 0.0 }
 0x15b   :  { %v478_v47 = vmul.f32 0.01, %v321_v43  ;;  %v324_v48 = vpop.f32.mrb[50].mxu0  ;;  %836 = vmatmul.mubr.f32.gmra.mrb[46].mxu1 %v539_v46  ;;  %vm414_vm0 = vcmp.gt.f32.partialorder %v321_v43, 0.0  ;;  %v2151_v46 = vmov 0.0|0.0  }
 0x15c   :  { %v325_v49 = vadd.f32 %v324_v48, %v2671_v13  ;;  %v326_v50 = vpop.f32.mrb[51].mxu0  ;;  %v541_v54 = vsel %vm413_vm1, %v319_v41, %v477_v45  ;;  %2116 = vmatprep.subr.bf16.mxu1 %v2151_v46  ;;  %2068 = vmatprep.subr.bf16.mxu0 %v2151_v46  ;;  %v621_v48 = vld [vmem:[%s3302_s4] sm:$0x3] }
 0x15d   :  { %v327_v51 = vadd.f32 %v326_v50, %v2677_v16  ;;  %v542_v52 = vsel %vm414_vm0, %v321_v43, %v478_v47  ;;  %v1610_v50 = vld [vmem:[%s3301_s7 + $0x18] sm:$0xff] }
 0x15e   :  { %v479_v53 = vmul.f32 0.01, %v325_v49  ;;  %841 = vmatprep.mubr.f32.mxu1 %v542_v52  ;;  %vm415_vm3 = vcmp.gt.f32.partialorder %v325_v49, 0.0 }
 0x15f   :  { %v480_v3 = vmul.f32 0.01, %v327_v51  ;;  %v330_v55 = vpop.f32.mrb[52].mxu0  ;;  %842 = vmatmul.mubr.f32.gmra.mrb[48].mxu1 %v541_v54  ;;  %vm416_vm2 = vcmp.gt.f32.partialorder %v327_v51, 0.0 }
 0x160   :  { %v331_v56 = vadd.f32 %v330_v55, %v2671_v13  ;;  %v332_v57 = vpop.f32.mrb[53].mxu0  ;;  %v543_v61 = vsel %vm415_vm3, %v325_v49, %v479_v53  ;;  %v1609_v49 = vld [vmem:[%s3301_s7 + $0x10] sm:$0xff]  ;;  %v2911_v53 = vrot.slane %v621_v48, %v2659_v9 }
 0x161   :  { %v333_v58 = vadd.f32 %v332_v57, %v2677_v16  ;;  %v544_v59 = vsel %vm416_vm2, %v327_v51, %v480_v3  ;;  %v2908_v51 = vrot.slane %v621_v48, %v2654_v7  ;;  %v2072_v52 = vpack.c.bf16 %v1610_v50, %v1609_v49  ;;  %v1621_v49 = vld [vmem:[%s3301_s7 + $0x70] sm:$0xff]  ;;  %v1622_v50 = vld [vmem:[%s3301_s7 + $0x78] sm:$0xff] }
 0x162   :  { %v481_v60 = vmul.f32 0.01, %v331_v56  ;;  %847 = vmatprep.mubr.f32.mxu1 %v544_v59  ;;  %vm417_vm5 = vcmp.gt.f32.partialorder %v331_v56, 0.0  ;;  %v1612_v59 = vld [vmem:[%s3301_s7 + $0x28] sm:$0xff] }
 0x163   :  { %v482_v62 = vmul.f32 0.01, %v333_v58  ;;  %v336_v63 = vpop.f32.mrb[54].mxu0  ;;  %848 = vmatmul.mubr.f32.gmra.mrb[50].mxu1 %v543_v61  ;;  %vm418_vm4 = vcmp.gt.f32.partialorder %v333_v58, 0.0 }
 0x164   :  { %v337_v0 = vadd.f32 %v336_v63, %v2671_v13  ;;  %v338_v1 = vpop.f32.mrb[55].mxu0  ;;  %v545_v6 = vsel %vm417_vm5, %v331_v56, %v481_v60 }
 0x165   :  { %v339_v2 = vadd.f32 %v338_v1, %v2677_v16  ;;  %v546_v4 = vsel %vm418_vm4, %v333_v58, %v482_v62  ;;  %v1611_v58 = vld [vmem:[%s3301_s7 + $0x20] sm:$0xff]  ;;  %v1613_v1 = vld [vmem:[%s3301_s7 + $0x30] sm:$0xff] }
 0x166   :  { %v483_v5 = vmul.f32 0.01, %v337_v0  ;;  %853 = vmatprep.mubr.f32.mxu1 %v546_v4  ;;  %vm419_vm7 = vcmp.gt.f32.partialorder %v337_v0, 0.0  ;;  %v2075_v62 = vpack.c.bf16 %v1612_v59, %v1611_v58  ;;  %v2090_v58 = vpack.c.bf16 %v1622_v50, %v1621_v49 }
 0x167   :  { %v484_v8 = vmul.f32 0.01, %v339_v2  ;;  %v342_v10 = vpop.f32.mrb[56].mxu0  ;;  %854 = vmatmul.mubr.f32.gmra.mrb[52].mxu1 %v545_v6  ;;  %vm420_vm6 = vcmp.gt.f32.partialorder %v339_v2, 0.0 }
 0x168   :  { %v343_v11 = vadd.f32 %v342_v10, %v2671_v13  ;;  %v344_v12 = vpop.f32.mrb[57].mxu0  ;;  %v547_v18 = vsel %vm419_vm7, %v337_v0, %v483_v5 }
 0x169   :  { %v345_v14 = vadd.f32 %v344_v12, %v2677_v16  ;;  %v548_v15 = vsel %vm420_vm6, %v339_v2, %v484_v8  ;;  %v1614_v2 = vld [vmem:[%s3301_s7 + $0x38] sm:$0xff] }
 0x16a   :  { %v485_v17 = vmul.f32 0.01, %v343_v11  ;;  %859 = vmatprep.mubr.f32.mxu1 %v548_v15  ;;  %vm421_vm9 = vcmp.gt.f32.partialorder %v343_v11, 0.0  ;;  %v2078_v12 = vpack.c.bf16 %v1614_v2, %v1613_v1 }
 0x16b   :  { %v486_v19 = vmul.f32 0.01, %v345_v14  ;;  %v348_v20 = vpop.f32.mrb[58].mxu0  ;;  %860 = vmatmul.mubr.f32.gmra.mrb[54].mxu1 %v547_v18  ;;  %vm422_vm8 = vcmp.gt.f32.partialorder %v345_v14, 0.0  ;;  %v1616_v18 = vld [vmem:[%s3301_s7 + $0x48] sm:$0xff] }
 0x16c   :  { %v349_v21 = vadd.f32 %v348_v20, %v2671_v13  ;;  %v350_v22 = vpop.f32.mrb[59].mxu0  ;;  %v549_v26 = vsel %vm421_vm9, %v343_v11, %v485_v17  ;;  %v1615_v17 = vld [vmem:[%s3301_s7 + $0x40] sm:$0xff] }
 0x16d   :  { %v351_v23 = vadd.f32 %v350_v22, %v2677_v16  ;;  %v550_v24 = vsel %vm422_vm8, %v345_v14, %v486_v19 }
 0x16e   :  { %v487_v25 = vmul.f32 0.01, %v349_v21  ;;  %865 = vmatprep.mubr.f32.mxu1 %v550_v24  ;;  %vm423_vm11 = vcmp.gt.f32.partialorder %v349_v21, 0.0 }
 0x16f   :  { %v488_v27 = vmul.f32 0.01, %v351_v23  ;;  %v354_v28 = vpop.f32.mrb[60].mxu0  ;;  %866 = vmatmul.mubr.f32.gmra.mrb[56].mxu1 %v549_v26  ;;  %vm424_vm10 = vcmp.gt.f32.partialorder %v351_v23, 0.0 }
 0x170   :  { %v355_v29 = vadd.f32 %v354_v28, %v2671_v13  ;;  %v356_v30 = vpop.f32.mrb[61].mxu0  ;;  %v551_v34 = vsel %vm423_vm11, %v349_v21, %v487_v25  ;;  %v2081_v25 = vpack.c.bf16 %v1616_v18, %v1615_v17  ;;  %v1617_v28 = vld [vmem:[%s3301_s7 + $0x50] sm:$0xff] }
 0x171   :  { %v357_v31 = vadd.f32 %v356_v30, %v2677_v16  ;;  %v552_v32 = vsel %vm424_vm10, %v351_v23, %v488_v27 }
 0x172   :  { %v489_v33 = vmul.f32 0.01, %v355_v29  ;;  %871 = vmatprep.mubr.f32.mxu1 %v552_v32  ;;  %vm425_vm13 = vcmp.gt.f32.partialorder %v355_v29, 0.0 }
 0x173   :  { %v490_v35 = vmul.f32 0.01, %v357_v31  ;;  %v360_v36 = vpop.f32.mrb[62].mxu0  ;;  %872 = vmatmul.mubr.f32.gmra.mrb[58].mxu1 %v551_v34  ;;  %vm426_vm12 = vcmp.gt.f32.partialorder %v357_v31, 0.0 }
 0x174   :  { %v361_v37 = vadd.f32 %v360_v36, %v2671_v13  ;;  %v362_v38 = vpop.f32.mrb[63].mxu0  ;;  %v553_v42 = vsel %vm425_vm13, %v355_v29, %v489_v33  ;;  %v1607_v13 = vld [vmem:[%s3301_s7] sm:$0xff]  ;;  %v1618_v29 = vld [vmem:[%s3301_s7 + $0x58] sm:$0xff] }
 0x175   :  { %v363_v39 = vadd.f32 %v362_v38, %v2677_v16  ;;  %v554_v40 = vsel %vm426_vm12, %v357_v31, %v490_v35  ;;  %v1608_v16 = vld [vmem:[%s3301_s7 + $0x8] sm:$0xff]  ;;  %v2084_v36 = vpack.c.bf16 %v1618_v29, %v1617_v28 }
 0x176   :  { %v491_v41 = vmul.f32 0.01, %v361_v37  ;;  %877 = vmatprep.mubr.f32.mxu1 %v554_v40  ;;  %vm427_vm15 = vcmp.gt.f32.partialorder %v361_v37, 0.0  ;;  %v2069_v47 = vpack.c.bf16 %v1608_v16, %v1607_v13  ;;  %v1620_v40 = vld [vmem:[%s3301_s7 + $0x68] sm:$0xff] }
 0x177   :  { %v492_v43 = vmul.f32 0.01, %v363_v39  ;;  %878 = vmatmul.mubr.f32.gmra.mrb[60].mxu1 %v553_v42  ;;  %vm428_vm14 = vcmp.gt.f32.partialorder %v363_v39, 0.0 }
 0x178   :  { %v555_v45 = vsel %vm427_vm15, %v361_v37, %v491_v41  ;;  %2132 = vmatpush1.bf16.msra.mxu1 %v2069_v47 }
 0x179   :  { %v556_v44 = vsel %vm428_vm14, %v363_v39, %v492_v43  ;;  %2117 = vmatprep.subr.bf16.mxu1 %v2151_v46  ;;  %v1619_v39 = vld [vmem:[%s3301_s7 + $0x60] sm:$0xff] }
 0x17a   :  { %883 = vmatprep.mubr.f32.mxu1 %v556_v44  ;;  %v2087_v16 = vpack.c.bf16 %v1620_v40, %v1619_v39 }
 0x17b   :  { %884 = vmatmul.mubr.f32.gmra.mrb[62].mxu1 %v555_v45 }
 0x17c   :  { %2133 = vmatpush1.bf16.msra.mxu1 %v2072_v52 }
 0x17d   :  { %2118 = vmatprep.subr.bf16.mxu1 %v2151_v46 }
 0x180   :  { %2134 = vmatpush1.bf16.msra.mxu1 %v2075_v62 }
 0x181   :  { %2119 = vmatprep.subr.bf16.mxu1 %v2151_v46 }
 0x184   :  { %2135 = vmatpush1.bf16.msra.mxu1 %v2078_v12 }
 0x185   :  { %2120 = vmatprep.subr.bf16.mxu1 %v2151_v46 }
 0x188   :  { %2136 = vmatpush1.bf16.msra.mxu1 %v2081_v25 }
 0x189   :  { %2121 = vmatprep.subr.bf16.mxu1 %v2151_v46 }
 0x18c   :  { %2137 = vmatpush1.bf16.msra.mxu1 %v2084_v36 }
 0x18d   :  { %2122 = vmatprep.subr.bf16.mxu1 %v2151_v46 }
 0x190   :  { %2138 = vmatpush1.bf16.msra.mxu1 %v2087_v16 }
 0x191   :  { %2123 = vmatprep.subr.bf16.mxu1 %v2151_v46 }
 0x194   :  { %2139 = vmatpush1.bf16.msra.mxu1 %v2090_v58 }
 0x195   :  { %2124 = vmatprep.subr.bf16.mxu1 %v2151_v46 }
 0x1d2   :  { %v699_v54 = vpop.f32.mrb[0].mxu1 }
 0x1d3   :  { %v700_v3 = vadd.f32 %v699_v54, %v2908_v51  ;;  %v701_v55 = vpop.f32.mrb[1].mxu1 }
 0x1d4   :  { %v702_v56 = vadd.f32 %v701_v55, %v2911_v53 }
 0x1d5   :  { %v954_v57 = vmul.f32 0.01, %v700_v3  ;;  %vm890_vm0 = vcmp.gt.f32.partialorder %v700_v3, 0.0 }
 0x1d6   :  { %v955_v60 = vmul.f32 0.01, %v702_v56  ;;  %v705_v61 = vpop.f32.mrb[2].mxu1  ;;  %vm891_vm1 = vcmp.gt.f32.partialorder %v702_v56, 0.0 }
 0x1d7   :  { %v706_v63 = vadd.f32 %v705_v61, %v2908_v51  ;;  %v707_v0 = vpop.f32.mrb[3].mxu1  ;;  %v1018_v6 = vsel %vm890_vm0, %v700_v3, %v954_v57  ;;  %v1623_v61 = vld [vmem:[%s3301_s7 + $0x80] sm:$0xff] }
 0x1d8   :  { %v708_v4 = vadd.f32 %v707_v0, %v2911_v53  ;;  %v1019_v5 = vsel %vm891_vm1, %v702_v56, %v955_v60 }
 0x1d9   :  { %v956_v8 = vmul.f32 0.01, %v706_v63  ;;  %1222 = vmatprep.mubr.f32.mxu0 %v1019_v5  ;;  %vm892_vm3 = vcmp.gt.f32.partialorder %v706_v63, 0.0 }
 0x1da   :  { %v957_v10 = vmul.f32 0.01, %v708_v4  ;;  %v711_v11 = vpop.f32.mrb[4].mxu1  ;;  %1223 = vmatmul.mubr.f32.vlgmr.msra.gmra.mrb[64].mxu0 %v1018_v6  ;;  %vm893_vm2 = vcmp.gt.f32.partialorder %v708_v4, 0.0 }
 0x1db   :  { %v712_v14 = vadd.f32 %v711_v11, %v2908_v51  ;;  %v713_v15 = vpop.f32.mrb[5].mxu1  ;;  %2070 = vmatpush1.bf16.msra.mxu0 %v2069_v47  ;;  %v1020_v22 = vsel %vm892_vm3, %v706_v63, %v956_v8  ;;  %v1625_v11 = vld [vmem:[%s3301_s7 + $0x90] sm:$0xff] }
 0x1dc   :  { %v714_v19 = vadd.f32 %v713_v15, %v2911_v53  ;;  %v1021_v20 = vsel %vm893_vm2, %v708_v4, %v957_v10  ;;  %2071 = vmatprep.subr.bf16.mxu0 %v2151_v46 }
 0x1dd   :  { %v958_v21 = vmul.f32 0.01, %v712_v14  ;;  %1228 = vmatprep.mubr.f32.mxu0 %v1021_v20  ;;  %vm894_vm5 = vcmp.gt.f32.partialorder %v712_v14, 0.0 }
 0x1de   :  { %v959_v23 = vmul.f32 0.01, %v714_v19  ;;  %v717_v24 = vpop.f32.mrb[6].mxu1  ;;  %1229 = vmatmul.mubr.f32.gmra.mrb[66].mxu0 %v1020_v22  ;;  %vm895_vm4 = vcmp.gt.f32.partialorder %v714_v19, 0.0 }
 0x1df   :  { %v718_v26 = vadd.f32 %v717_v24, %v2908_v51  ;;  %v719_v27 = vpop.f32.mrb[7].mxu1  ;;  %2073 = vmatpush1.bf16.msra.mxu0 %v2072_v52  ;;  %v1022_v33 = vsel %vm894_vm5, %v712_v14, %v958_v21  ;;  %v1627_v24 = vld [vmem:[%s3301_s7 + $0xa0] sm:$0xff] }
 0x1e0   :  { %v720_v30 = vadd.f32 %v719_v27, %v2911_v53  ;;  %v1023_v31 = vsel %vm895_vm4, %v714_v19, %v959_v23  ;;  %2074 = vmatprep.subr.bf16.mxu0 %v2151_v46 }
 0x1e1   :  { %v960_v32 = vmul.f32 0.01, %v718_v26  ;;  %1234 = vmatprep.mubr.f32.mxu0 %v1023_v31  ;;  %vm896_vm7 = vcmp.gt.f32.partialorder %v718_v26, 0.0 }
 0x1e2   :  { %v961_v34 = vmul.f32 0.01, %v720_v30  ;;  %v723_v35 = vpop.f32.mrb[8].mxu1  ;;  %1235 = vmatmul.mubr.f32.gmra.mrb[68].mxu0 %v1022_v33  ;;  %vm897_vm6 = vcmp.gt.f32.partialorder %v720_v30, 0.0 }
 0x1e3   :  { %v724_v37 = vadd.f32 %v723_v35, %v2908_v51  ;;  %v725_v38 = vpop.f32.mrb[9].mxu1  ;;  %2076 = vmatpush1.bf16.msra.mxu0 %v2075_v62  ;;  %v1024_v44 = vsel %vm896_vm7, %v718_v26, %v960_v32  ;;  %v1624_v62 = vld [vmem:[%s3301_s7 + $0x88] sm:$0xff]  ;;  %v1629_v35 = vld [vmem:[%s3301_s7 + $0xb0] sm:$0xff] }
 0x1e4   :  { %v726_v41 = vadd.f32 %v725_v38, %v2911_v53  ;;  %v1025_v42 = vsel %vm897_vm6, %v720_v30, %v961_v34  ;;  %2077 = vmatprep.subr.bf16.mxu0 %v2151_v46  ;;  %v2093_v6 = vpack.c.bf16 %v1624_v62, %v1623_v61 }
 0x1e5   :  { %v962_v43 = vmul.f32 0.01, %v724_v37  ;;  %1240 = vmatprep.mubr.f32.mxu0 %v1025_v42  ;;  %vm898_vm9 = vcmp.gt.f32.partialorder %v724_v37, 0.0 }
 0x1e6   :  { %v963_v45 = vmul.f32 0.01, %v726_v41  ;;  %v729_v13 = vpop.f32.mrb[10].mxu1  ;;  %1241 = vmatmul.mubr.f32.gmra.mrb[70].mxu0 %v1024_v44  ;;  %vm899_vm8 = vcmp.gt.f32.partialorder %v726_v41, 0.0  ;;  %2140 = vmatpush1.bf16.msra.mxu1 %v2093_v6 }
 0x1e7   :  { %v730_v47 = vadd.f32 %v729_v13, %v2908_v51  ;;  %v731_v48 = vpop.f32.mrb[11].mxu1  ;;  %2079 = vmatpush1.bf16.msra.mxu0 %v2078_v12  ;;  %v1026_v55 = vsel %vm898_vm9, %v724_v37, %v962_v43  ;;  %v1626_v12 = vld [vmem:[%s3301_s7 + $0x98] sm:$0xff]  ;;  %2125 = vmatprep.subr.bf16.mxu1 %v2151_v46  ;;  %v1631_v13 = vld [vmem:[%s3301_s7 + $0xc0] sm:$0xff] }
 0x1e8   :  { %v732_v52 = vadd.f32 %v731_v48, %v2911_v53  ;;  %v1027_v54 = vsel %vm899_vm8, %v726_v41, %v963_v45  ;;  %2080 = vmatprep.subr.bf16.mxu0 %v2151_v46  ;;  %v2096_v21 = vpack.c.bf16 %v1626_v12, %v1625_v11 }
 0x1e9   :  { %v964_v3 = vmul.f32 0.01, %v730_v47  ;;  %1246 = vmatprep.mubr.f32.mxu0 %v1027_v54  ;;  %vm900_vm11 = vcmp.gt.f32.partialorder %v730_v47, 0.0 }
 0x1ea   :  { %v965_v56 = vmul.f32 0.01, %v732_v52  ;;  %v735_v57 = vpop.f32.mrb[12].mxu1  ;;  %1247 = vmatmul.mubr.f32.gmra.mrb[72].mxu0 %v1026_v55  ;;  %vm901_vm10 = vcmp.gt.f32.partialorder %v732_v52, 0.0  ;;  %2141 = vmatpush1.bf16.msra.mxu1 %v2096_v21 }
 0x1eb   :  { %v736_v59 = vadd.f32 %v735_v57, %v2908_v51  ;;  %v737_v60 = vpop.f32.mrb[13].mxu1  ;;  %2082 = vmatpush1.bf16.msra.mxu0 %v2081_v25  ;;  %v1028_v2 = vsel %vm900_vm11, %v730_v47, %v964_v3  ;;  %v1628_v25 = vld [vmem:[%s3301_s7 + $0xa8] sm:$0xff]  ;;  %2126 = vmatprep.subr.bf16.mxu1 %v2151_v46  ;;  %v1633_v57 = vld [vmem:[%s3301_s7 + $0xd0] sm:$0xff] }
 0x1ec   :  { %v738_v63 = vadd.f32 %v737_v60, %v2911_v53  ;;  %v1029_v0 = vsel %vm901_vm10, %v732_v52, %v965_v56  ;;  %2083 = vmatprep.subr.bf16.mxu0 %v2151_v46  ;;  %v2099_v32 = vpack.c.bf16 %v1628_v25, %v1627_v24 }
 0x1ed   :  { %v966_v1 = vmul.f32 0.01, %v736_v59  ;;  %1252 = vmatprep.mubr.f32.mxu0 %v1029_v0  ;;  %vm902_vm13 = vcmp.gt.f32.partialorder %v736_v59, 0.0 }
 0x1ee   :  { %v967_v4 = vmul.f32 0.01, %v738_v63  ;;  %v741_v5 = vpop.f32.mrb[14].mxu1  ;;  %1253 = vmatmul.mubr.f32.gmra.mrb[74].mxu0 %v1028_v2  ;;  %vm903_vm12 = vcmp.gt.f32.partialorder %v738_v63, 0.0  ;;  %2142 = vmatpush1.bf16.msra.mxu1 %v2099_v32 }
 0x1ef   :  { %v742_v8 = vadd.f32 %v741_v5, %v2908_v51  ;;  %v743_v10 = vpop.f32.mrb[15].mxu1  ;;  %2085 = vmatpush1.bf16.msra.mxu0 %v2084_v36  ;;  %v1030_v18 = vsel %vm902_vm13, %v736_v59, %v966_v1  ;;  %v1630_v36 = vld [vmem:[%s3301_s7 + $0xb8] sm:$0xff]  ;;  %2127 = vmatprep.subr.bf16.mxu1 %v2151_v46 }
 0x1f0   :  { %v744_v14 = vadd.f32 %v743_v10, %v2911_v53  ;;  %v1031_v15 = vsel %vm903_vm12, %v738_v63, %v967_v4  ;;  %2086 = vmatprep.subr.bf16.mxu0 %v2151_v46  ;;  %v2102_v43 = vpack.c.bf16 %v1630_v36, %v1629_v35 }
 0x1f1   :  { %v968_v17 = vmul.f32 0.01, %v742_v8  ;;  %1258 = vmatprep.mubr.f32.mxu0 %v1031_v15  ;;  %vm904_vm15 = vcmp.gt.f32.partialorder %v742_v8, 0.0 }
 0x1f2   :  { %v969_v19 = vmul.f32 0.01, %v744_v14  ;;  %v747_v20 = vpop.f32.mrb[16].mxu1  ;;  %1259 = vmatmul.mubr.f32.gmra.mrb[76].mxu0 %v1030_v18  ;;  %vm905_vm14 = vcmp.gt.f32.partialorder %v744_v14, 0.0  ;;  %2143 = vmatpush1.bf16.msra.mxu1 %v2102_v43 }
 0x1f3   :  { %v748_v22 = vadd.f32 %v747_v20, %v2908_v51  ;;  %v749_v23 = vpop.f32.mrb[17].mxu1  ;;  %2088 = vmatpush1.bf16.msra.mxu0 %v2087_v16  ;;  %v1032_v29 = vsel %vm904_vm15, %v742_v8, %v968_v17  ;;  %v1632_v16 = vld [vmem:[%s3301_s7 + $0xc8] sm:$0xff]  ;;  %2128 = vmatprep.subr.bf16.mxu1 %v2151_v46 }
 0x1f4   :  { %v750_v26 = vadd.f32 %v749_v23, %v2911_v53  ;;  %v1033_v27 = vsel %vm905_vm14, %v744_v14, %v969_v19  ;;  %2089 = vmatprep.subr.bf16.mxu0 %v2151_v46  ;;  %v2105_v3 = vpack.c.bf16 %v1632_v16, %v1631_v13 }
 0x1f5   :  { %v970_v28 = vmul.f32 0.01, %v748_v22  ;;  %1264 = vmatprep.mubr.f32.mxu0 %v1033_v27  ;;  %vm906_vm1 = vcmp.gt.f32.partialorder %v748_v22, 0.0 }
 0x1f6   :  { %v971_v30 = vmul.f32 0.01, %v750_v26  ;;  %v753_v31 = vpop.f32.mrb[18].mxu1  ;;  %1265 = vmatmul.mubr.f32.gmra.mrb[78].mxu0 %v1032_v29  ;;  %vm907_vm0 = vcmp.gt.f32.partialorder %v750_v26, 0.0  ;;  %2144 = vmatpush1.bf16.msra.mxu1 %v2105_v3 }
 0x1f7   :  { %v754_v33 = vadd.f32 %v753_v31, %v2908_v51  ;;  %v755_v34 = vpop.f32.mrb[19].mxu1  ;;  %2091 = vmatpush1.bf16.msra.mxu0 %v2090_v58  ;;  %v1034_v40 = vsel %vm906_vm1, %v748_v22, %v970_v28  ;;  %v1634_v58 = vld [vmem:[%s3301_s7 + $0xd8] sm:$0xff]  ;;  %2129 = vmatprep.subr.bf16.mxu1 %v2151_v46 }
 0x1f8   :  { %v756_v37 = vadd.f32 %v755_v34, %v2911_v53  ;;  %v1035_v38 = vsel %vm907_vm0, %v750_v26, %v971_v30  ;;  %2092 = vmatprep.subr.bf16.mxu0 %v2151_v46  ;;  %v2108_v1 = vpack.c.bf16 %v1634_v58, %v1633_v57 }
 0x1f9   :  { %v972_v39 = vmul.f32 0.01, %v754_v33  ;;  %1270 = vmatprep.mubr.f32.mxu0 %v1035_v38  ;;  %vm908_vm3 = vcmp.gt.f32.partialorder %v754_v33, 0.0 }
 0x1fa   :  { %v973_v41 = vmul.f32 0.01, %v756_v37  ;;  %v759_v42 = vpop.f32.mrb[20].mxu1  ;;  %1271 = vmatmul.mubr.f32.gmra.mrb[80].mxu0 %v1034_v40  ;;  %vm909_vm2 = vcmp.gt.f32.partialorder %v756_v37, 0.0  ;;  %2145 = vmatpush1.bf16.msra.mxu1 %v2108_v1 }
 0x1fb   :  { %v760_v44 = vadd.f32 %v759_v42, %v2908_v51  ;;  %v761_v45 = vpop.f32.mrb[21].mxu1  ;;  %2094 = vmatpush1.bf16.msra.mxu0 %v2093_v6  ;;  %v1036_v50 = vsel %vm908_vm3, %v754_v33, %v972_v39  ;;  %2130 = vmatprep.subr.bf16.mxu1 %v2151_v46 }
 0x1fc   :  { %v762_v47 = vadd.f32 %v761_v45, %v2911_v53  ;;  %v1037_v48 = vsel %vm909_vm2, %v756_v37, %v973_v41  ;;  %2095 = vmatprep.subr.bf16.mxu0 %v2151_v46 }
 0x1fd   :  { %v974_v49 = vmul.f32 0.01, %v760_v44  ;;  %1276 = vmatprep.mubr.f32.mxu0 %v1037_v48  ;;  %vm910_vm5 = vcmp.gt.f32.partialorder %v760_v44, 0.0 }
 0x1fe   :  { %v975_v52 = vmul.f32 0.01, %v762_v47  ;;  %v765_v54 = vpop.f32.mrb[22].mxu1  ;;  %1277 = vmatmul.mubr.f32.gmra.mrb[82].mxu0 %v1036_v50  ;;  %vm911_vm4 = vcmp.gt.f32.partialorder %v762_v47, 0.0 }
 0x1ff   :  { %v766_v55 = vadd.f32 %v765_v54, %v2908_v51  ;;  %v767_v56 = vpop.f32.mrb[23].mxu1  ;;  %2097 = vmatpush1.bf16.msra.mxu0 %v2096_v21  ;;  %v1038_v62 = vsel %vm910_vm5, %v760_v44, %v974_v49 }
 0x200   :  { %v768_v59 = vadd.f32 %v767_v56, %v2911_v53  ;;  %v1039_v60 = vsel %vm911_vm4, %v762_v47, %v975_v52  ;;  %2098 = vmatprep.subr.bf16.mxu0 %v2151_v46 }
 0x201   :  { %v976_v61 = vmul.f32 0.01, %v766_v55  ;;  %1282 = vmatprep.mubr.f32.mxu0 %v1039_v60  ;;  %vm912_vm7 = vcmp.gt.f32.partialorder %v766_v55, 0.0 }
 0x202   :  { %v977_v63 = vmul.f32 0.01, %v768_v59  ;;  %v771_v0 = vpop.f32.mrb[24].mxu1  ;;  %1283 = vmatmul.mubr.f32.gmra.mrb[84].mxu0 %v1038_v62  ;;  %vm913_vm6 = vcmp.gt.f32.partialorder %v768_v59, 0.0 }
 0x203   :  { %v772_v2 = vadd.f32 %v771_v0, %v2908_v51  ;;  %v773_v4 = vpop.f32.mrb[25].mxu1  ;;  %2100 = vmatpush1.bf16.msra.mxu0 %v2099_v32  ;;  %v1040_v10 = vsel %vm912_vm7, %v766_v55, %v976_v61 }
 0x204   :  { %v774_v5 = vadd.f32 %v773_v4, %v2911_v53  ;;  %v1041_v6 = vsel %vm913_vm6, %v768_v59, %v977_v63  ;;  %2101 = vmatprep.subr.bf16.mxu0 %v2151_v46 }
 0x205   :  { %v978_v8 = vmul.f32 0.01, %v772_v2  ;;  %1288 = vmatprep.mubr.f32.mxu0 %v1041_v6  ;;  %vm914_vm9 = vcmp.gt.f32.partialorder %v772_v2, 0.0 }
 0x206   :  { %v979_v11 = vmul.f32 0.01, %v774_v5  ;;  %v777_v12 = vpop.f32.mrb[26].mxu1  ;;  %1289 = vmatmul.mubr.f32.gmra.mrb[86].mxu0 %v1040_v10  ;;  %vm915_vm8 = vcmp.gt.f32.partialorder %v774_v5, 0.0 }
 0x207   :  { %v778_v14 = vadd.f32 %v777_v12, %v2908_v51  ;;  %v779_v15 = vpop.f32.mrb[27].mxu1  ;;  %2103 = vmatpush1.bf16.msra.mxu0 %v2102_v43  ;;  %v1042_v20 = vsel %vm914_vm9, %v772_v2, %v978_v8 }
 0x208   :  { %v780_v17 = vadd.f32 %v779_v15, %v2911_v53  ;;  %v1043_v18 = vsel %vm915_vm8, %v774_v5, %v979_v11  ;;  %2104 = vmatprep.subr.bf16.mxu0 %v2151_v46 }
 0x209   :  { %v980_v19 = vmul.f32 0.01, %v778_v14  ;;  %1294 = vmatprep.mubr.f32.mxu0 %v1043_v18  ;;  %vm916_vm11 = vcmp.gt.f32.partialorder %v778_v14, 0.0 }
 0x20a   :  { %v981_v21 = vmul.f32 0.01, %v780_v17  ;;  %v783_v22 = vpop.f32.mrb[28].mxu1  ;;  %1295 = vmatmul.mubr.f32.gmra.mrb[88].mxu0 %v1042_v20  ;;  %vm917_vm10 = vcmp.gt.f32.partialorder %v780_v17, 0.0 }
 0x20b   :  { %v784_v23 = vadd.f32 %v783_v22, %v2908_v51  ;;  %v785_v24 = vpop.f32.mrb[29].mxu1  ;;  %2106 = vmatpush1.bf16.msra.mxu0 %v2105_v3  ;;  %v1044_v28 = vsel %vm916_vm11, %v778_v14, %v980_v19 }
 0x20c   :  { %v786_v25 = vadd.f32 %v785_v24, %v2911_v53  ;;  %v1045_v26 = vsel %vm917_vm10, %v780_v17, %v981_v21  ;;  %2107 = vmatprep.subr.bf16.mxu0 %v2151_v46 }
 0x20d   :  { %v982_v27 = vmul.f32 0.01, %v784_v23  ;;  %1300 = vmatprep.mubr.f32.mxu0 %v1045_v26  ;;  %vm918_vm13 = vcmp.gt.f32.partialorder %v784_v23, 0.0 }
 0x20e   :  { %v983_v29 = vmul.f32 0.01, %v786_v25  ;;  %v789_v30 = vpop.f32.mrb[30].mxu1  ;;  %1301 = vmatmul.mubr.f32.gmra.mrb[90].mxu0 %v1044_v28  ;;  %vm919_vm12 = vcmp.gt.f32.partialorder %v786_v25, 0.0 }
 0x20f   :  { %v790_v31 = vadd.f32 %v789_v30, %v2908_v51  ;;  %v791_v32 = vpop.f32.mrb[31].mxu1  ;;  %2109 = vmatpush1.bf16.msra.mxu0 %v2108_v1  ;;  %v1046_v36 = vsel %vm918_vm13, %v784_v23, %v982_v27  ;;  %v1635_v30 = vld [vmem:[%s3301_s7 + $0xe0] sm:$0xff] }
 0x210   :  { %v792_v33 = vadd.f32 %v791_v32, %v2911_v53  ;;  %v1047_v34 = vsel %vm919_vm12, %v786_v25, %v983_v29  ;;  %2110 = vmatprep.subr.bf16.mxu0 %v2151_v46 }
 0x211   :  { %v984_v35 = vmul.f32 0.01, %v790_v31  ;;  %1306 = vmatprep.mubr.f32.mxu0 %v1047_v34  ;;  %vm920_vm15 = vcmp.gt.f32.partialorder %v790_v31, 0.0 }
 0x212   :  { %v985_v37 = vmul.f32 0.01, %v792_v33  ;;  %v795_v38 = vpop.f32.mrb[32].mxu1  ;;  %1307 = vmatmul.mubr.f32.gmra.mrb[92].mxu0 %v1046_v36  ;;  %vm921_vm14 = vcmp.gt.f32.partialorder %v792_v33, 0.0 }
 0x213   :  { %v796_v39 = vadd.f32 %v795_v38, %v2908_v51  ;;  %v797_v40 = vpop.f32.mrb[33].mxu1  ;;  %v1048_v44 = vsel %vm920_vm15, %v790_v31, %v984_v35  ;;  %v1636_v31 = vld [vmem:[%s3301_s7 + $0xe8] sm:$0xff] }
 0x214   :  { %v798_v41 = vadd.f32 %v797_v40, %v2911_v53  ;;  %v1049_v42 = vsel %vm921_vm14, %v792_v33, %v985_v37  ;;  %v2111_v34 = vpack.c.bf16 %v1636_v31, %v1635_v30 }
 0x215   :  { %v986_v43 = vmul.f32 0.01, %v796_v39  ;;  %1312 = vmatprep.mubr.f32.mxu0 %v1049_v42  ;;  %vm922_vm1 = vcmp.gt.f32.partialorder %v796_v39, 0.0  ;;  %v1638_v42 = vld [vmem:[%s3301_s7 + $0xf8] sm:$0xff] }
 0x216   :  { %v987_v45 = vmul.f32 0.01, %v798_v41  ;;  %v801_v13 = vpop.f32.mrb[34].mxu1  ;;  %1313 = vmatmul.mubr.f32.gmra.mrb[94].mxu0 %v1048_v44  ;;  %vm923_vm0 = vcmp.gt.f32.partialorder %v798_v41, 0.0  ;;  %2146 = vmatpush1.bf16.msra.mxu1 %v2111_v34 }
 0x217   :  { %v802_v16 = vadd.f32 %v801_v13, %v2908_v51  ;;  %v803_v47 = vpop.f32.mrb[35].mxu1  ;;  %v1050_v52 = vsel %vm922_vm1, %v796_v39, %v986_v43  ;;  %2112 = vmatpush1.bf16.msra.mxu0 %v2111_v34  ;;  %2131 = vmatprep.subr.bf16.mxu1 %v2151_v46 }
 0x218   :  { %v804_v48 = vadd.f32 %v803_v47, %v2911_v53  ;;  %v1051_v49 = vsel %vm923_vm0, %v798_v41, %v987_v45  ;;  %v1637_v41 = vld [vmem:[%s3301_s7 + $0xf0] sm:$0xff]  ;;  %2113 = vmatprep.subr.bf16.mxu0 %v2151_v46 }
 0x219   :  { %v988_v50 = vmul.f32 0.01, %v802_v16  ;;  %1318 = vmatprep.mubr.f32.mxu0 %v1051_v49  ;;  %vm924_vm3 = vcmp.gt.f32.partialorder %v802_v16, 0.0  ;;  %v2114_v45 = vpack.c.bf16 %v1638_v42, %v1637_v41 }
 0x21a   :  { %v989_v54 = vmul.f32 0.01, %v804_v48  ;;  %v807_v3 = vpop.f32.mrb[36].mxu1  ;;  %1319 = vmatmul.mubr.f32.gmra.mrb[96].mxu0 %v1050_v52  ;;  %vm925_vm2 = vcmp.gt.f32.partialorder %v804_v48, 0.0 }
 0x21b   :  { %v808_v55 = vadd.f32 %v807_v3, %v2908_v51  ;;  %v809_v56 = vpop.f32.mrb[37].mxu1  ;;  %v1052_v60 = vsel %vm924_vm3, %v802_v16, %v988_v50  ;;  %2147 = vmatpush1.bf16.msra.mxu1 %v2114_v45  ;;  %2115 = vmatpush1.bf16.msra.mxu0 %v2114_v45 }
 0x21c   :  { %v810_v57 = vadd.f32 %v809_v56, %v2911_v53  ;;  %v1053_v58 = vsel %vm925_vm2, %v804_v48, %v989_v54 }
 0x21d   :  { %v990_v59 = vmul.f32 0.01, %v808_v55  ;;  %1324 = vmatprep.mubr.f32.mxu0 %v1053_v58  ;;  %vm926_vm5 = vcmp.gt.f32.partialorder %v808_v55, 0.0 }
 0x21e   :  { %v991_v61 = vmul.f32 0.01, %v810_v57  ;;  %v813_v62 = vpop.f32.mrb[38].mxu1  ;;  %1325 = vmatmul.mubr.f32.gmra.mrb[98].mxu0 %v1052_v60  ;;  %vm927_vm4 = vcmp.gt.f32.partialorder %v810_v57, 0.0 }
 0x21f   :  { %v814_v63 = vadd.f32 %v813_v62, %v2908_v51  ;;  %v815_v0 = vpop.f32.mrb[39].mxu1  ;;  %v1054_v5 = vsel %vm926_vm5, %v808_v55, %v990_v59 }
 0x220   :  { %v816_v1 = vadd.f32 %v815_v0, %v2911_v53  ;;  %v1055_v2 = vsel %vm927_vm4, %v810_v57, %v991_v61 }
 0x221   :  { %v992_v4 = vmul.f32 0.01, %v814_v63  ;;  %1330 = vmatprep.mubr.f32.mxu0 %v1055_v2  ;;  %vm928_vm7 = vcmp.gt.f32.partialorder %v814_v63, 0.0 }
 0x222   :  { %v993_v6 = vmul.f32 0.01, %v816_v1  ;;  %v819_v8 = vpop.f32.mrb[40].mxu1  ;;  %1331 = vmatmul.mubr.f32.gmra.mrb[100].mxu0 %v1054_v5  ;;  %vm929_vm6 = vcmp.gt.f32.partialorder %v816_v1, 0.0 }
 0x223   :  { %v820_v10 = vadd.f32 %v819_v8, %v2908_v51  ;;  %v821_v11 = vpop.f32.mrb[41].mxu1  ;;  %v1056_v17 = vsel %vm928_vm7, %v814_v63, %v992_v4 }
 0x224   :  { %v822_v12 = vadd.f32 %v821_v11, %v2911_v53  ;;  %v1057_v14 = vsel %vm929_vm6, %v816_v1, %v993_v6 }
 0x225   :  { %v994_v15 = vmul.f32 0.01, %v820_v10  ;;  %1336 = vmatprep.mubr.f32.mxu0 %v1057_v14  ;;  %vm930_vm9 = vcmp.gt.f32.partialorder %v820_v10, 0.0 }
 0x226   :  { %v995_v18 = vmul.f32 0.01, %v822_v12  ;;  %v825_v19 = vpop.f32.mrb[42].mxu1  ;;  %1337 = vmatmul.mubr.f32.gmra.mrb[102].mxu0 %v1056_v17  ;;  %vm931_vm8 = vcmp.gt.f32.partialorder %v822_v12, 0.0 }
 0x227   :  { %v826_v20 = vadd.f32 %v825_v19, %v2908_v51  ;;  %v827_v21 = vpop.f32.mrb[43].mxu1  ;;  %v1058_v25 = vsel %vm930_vm9, %v820_v10, %v994_v15 }
 0x228   :  { %v828_v22 = vadd.f32 %v827_v21, %v2911_v53  ;;  %v1059_v23 = vsel %vm931_vm8, %v822_v12, %v995_v18 }
 0x229   :  { %v996_v24 = vmul.f32 0.01, %v826_v20  ;;  %1342 = vmatprep.mubr.f32.mxu0 %v1059_v23  ;;  %vm932_vm11 = vcmp.gt.f32.partialorder %v826_v20, 0.0 }
 0x22a   :  { %v997_v26 = vmul.f32 0.01, %v828_v22  ;;  %v831_v27 = vpop.f32.mrb[44].mxu1  ;;  %1343 = vmatmul.mubr.f32.gmra.mrb[104].mxu0 %v1058_v25  ;;  %vm933_vm10 = vcmp.gt.f32.partialorder %v828_v22, 0.0 }
 0x22b   :  { %v832_v28 = vadd.f32 %v831_v27, %v2908_v51  ;;  %v833_v29 = vpop.f32.mrb[45].mxu1  ;;  %v1060_v36 = vsel %vm932_vm11, %v826_v20, %v996_v24 }
 0x22c   :  { %v834_v32 = vadd.f32 %v833_v29, %v2911_v53  ;;  %v1061_v33 = vsel %vm933_vm10, %v828_v22, %v997_v26 }
 0x22d   :  { %v998_v35 = vmul.f32 0.01, %v832_v28  ;;  %1348 = vmatprep.mubr.f32.mxu0 %v1061_v33  ;;  %vm934_vm13 = vcmp.gt.f32.partialorder %v832_v28, 0.0 }
 0x22e   :  { %v999_v37 = vmul.f32 0.01, %v834_v32  ;;  %v837_v38 = vpop.f32.mrb[46].mxu1  ;;  %1349 = vmatmul.mubr.f32.gmra.mrb[106].mxu0 %v1060_v36  ;;  %vm935_vm12 = vcmp.gt.f32.partialorder %v834_v32, 0.0 }
 0x22f   :  { %v838_v39 = vadd.f32 %v837_v38, %v2908_v51  ;;  %v839_v40 = vpop.f32.mrb[47].mxu1  ;;  %v1062_v16 = vsel %vm934_vm13, %v832_v28, %v998_v35 }
 0x230   :  { %v840_v43 = vadd.f32 %v839_v40, %v2911_v53  ;;  %v1063_v44 = vsel %vm935_vm12, %v834_v32, %v999_v37 }
 0x231   :  { %v1000_v13 = vmul.f32 0.01, %v838_v39  ;;  %1354 = vmatprep.mubr.f32.mxu0 %v1063_v44  ;;  %vm936_vm15 = vcmp.gt.f32.partialorder %v838_v39, 0.0 }
 0x232   :  { %v1001_v47 = vmul.f32 0.01, %v840_v43  ;;  %v843_v48 = vpop.f32.mrb[48].mxu1  ;;  %1355 = vmatmul.mubr.f32.gmra.mrb[108].mxu0 %v1062_v16  ;;  %vm937_vm14 = vcmp.gt.f32.partialorder %v840_v43, 0.0 }
 0x233   :  { %v844_v49 = vadd.f32 %v843_v48, %v2908_v51  ;;  %v845_v50 = vpop.f32.mrb[49].mxu1  ;;  %v1064_v46 = vsel %vm936_vm15, %v838_v39, %v1000_v13 }
 0x234   :  { %v846_v52 = vadd.f32 %v845_v50, %v2911_v53  ;;  %v1065_v54 = vsel %vm937_vm14, %v840_v43, %v1001_v47 }
 0x235   :  { %v1002_v3 = vmul.f32 0.01, %v844_v49  ;;  %1360 = vmatprep.mubr.f32.mxu0 %v1065_v54  ;;  %vm938_vm1 = vcmp.gt.f32.partialorder %v844_v49, 0.0 }
 0x236   :  { %v1003_v55 = vmul.f32 0.01, %v846_v52  ;;  %v849_v56 = vpop.f32.mrb[50].mxu1  ;;  %1361 = vmatmul.mubr.f32.gmra.mrb[110].mxu0 %v1064_v46  ;;  %vm939_vm0 = vcmp.gt.f32.partialorder %v846_v52, 0.0  ;;  %v1146_v46 = vld [vmem:[%s3303_s6] sm:$0x3] }
 0x237   :  { %v850_v57 = vadd.f32 %v849_v56, %v2908_v51  ;;  %v851_v58 = vpop.f32.mrb[51].mxu1  ;;  %v1066_v62 = vsel %vm938_vm1, %v844_v49, %v1002_v3 }
 0x238   :  { %v852_v59 = vadd.f32 %v851_v58, %v2911_v53  ;;  %v1067_v60 = vsel %vm939_vm0, %v846_v52, %v1003_v55 }
 0x239   :  { %v1004_v61 = vmul.f32 0.01, %v850_v57  ;;  %1366 = vmatprep.mubr.f32.mxu0 %v1067_v60  ;;  %vm940_vm3 = vcmp.gt.f32.partialorder %v850_v57, 0.0 }
 0x23a   :  { %v1005_v63 = vmul.f32 0.01, %v852_v59  ;;  %v855_v0 = vpop.f32.mrb[52].mxu1  ;;  %1367 = vmatmul.mubr.f32.gmra.mrb[112].mxu0 %v1066_v62  ;;  %vm941_vm2 = vcmp.gt.f32.partialorder %v852_v59, 0.0 }
 0x23b   :  { %v856_v1 = vadd.f32 %v855_v0, %v2908_v51  ;;  %v857_v2 = vpop.f32.mrb[53].mxu1  ;;  %v1068_v8 = vsel %vm940_vm3, %v850_v57, %v1004_v61 }
 0x23c   :  { %v858_v4 = vadd.f32 %v857_v2, %v2911_v53  ;;  %v1069_v5 = vsel %vm941_vm2, %v852_v59, %v1005_v63 }
 0x23d   :  { %v1006_v6 = vmul.f32 0.01, %v856_v1  ;;  %1372 = vmatprep.mubr.f32.mxu0 %v1069_v5  ;;  %vm942_vm5 = vcmp.gt.f32.partialorder %v856_v1, 0.0 }
 0x23e   :  { %v1007_v10 = vmul.f32 0.01, %v858_v4  ;;  %v861_v11 = vpop.f32.mrb[54].mxu1  ;;  %1373 = vmatmul.mubr.f32.gmra.mrb[114].mxu0 %v1068_v8  ;;  %vm943_vm4 = vcmp.gt.f32.partialorder %v858_v4, 0.0 }
 0x23f   :  { %v862_v12 = vadd.f32 %v861_v11, %v2908_v51  ;;  %v863_v14 = vpop.f32.mrb[55].mxu1  ;;  %v1070_v19 = vsel %vm942_vm5, %v856_v1, %v1006_v6 }
 0x240   :  { %v864_v15 = vadd.f32 %v863_v14, %v2911_v53  ;;  %v1071_v17 = vsel %vm943_vm4, %v858_v4, %v1007_v10 }
 0x241   :  { %v1008_v18 = vmul.f32 0.01, %v862_v12  ;;  %1378 = vmatprep.mubr.f32.mxu0 %v1071_v17  ;;  %vm944_vm7 = vcmp.gt.f32.partialorder %v862_v12, 0.0 }
 0x242   :  { %v1009_v20 = vmul.f32 0.01, %v864_v15  ;;  %v867_v21 = vpop.f32.mrb[56].mxu1  ;;  %1379 = vmatmul.mubr.f32.gmra.mrb[116].mxu0 %v1070_v19  ;;  %vm945_vm6 = vcmp.gt.f32.partialorder %v864_v15, 0.0 }
 0x243   :  { %v868_v22 = vadd.f32 %v867_v21, %v2908_v51  ;;  %v869_v23 = vpop.f32.mrb[57].mxu1  ;;  %v1072_v27 = vsel %vm944_vm7, %v862_v12, %v1008_v18 }
 0x244   :  { %v870_v24 = vadd.f32 %v869_v23, %v2911_v53  ;;  %v1073_v25 = vsel %vm945_vm6, %v864_v15, %v1009_v20 }
 0x245   :  { %v1010_v26 = vmul.f32 0.01, %v868_v22  ;;  %1384 = vmatprep.mubr.f32.mxu0 %v1073_v25  ;;  %vm946_vm9 = vcmp.gt.f32.partialorder %v868_v22, 0.0 }
 0x246   :  { %v1011_v28 = vmul.f32 0.01, %v870_v24  ;;  %v873_v29 = vpop.f32.mrb[58].mxu1  ;;  %1385 = vmatmul.mubr.f32.gmra.mrb[118].mxu0 %v1072_v27  ;;  %vm947_vm8 = vcmp.gt.f32.partialorder %v870_v24, 0.0 }
 0x247   :  { %v874_v30 = vadd.f32 %v873_v29, %v2908_v51  ;;  %v875_v31 = vpop.f32.mrb[59].mxu1  ;;  %v1074_v35 = vsel %vm946_vm9, %v868_v22, %v1010_v26 }
 0x248   :  { %v876_v32 = vadd.f32 %v875_v31, %v2911_v53  ;;  %v1075_v33 = vsel %vm947_vm8, %v870_v24, %v1011_v28 }
 0x249   :  { %v1012_v34 = vmul.f32 0.01, %v874_v30  ;;  %1390 = vmatprep.mubr.f32.mxu0 %v1075_v33  ;;  %vm948_vm11 = vcmp.gt.f32.partialorder %v874_v30, 0.0 }
 0x24a   :  { %v1013_v36 = vmul.f32 0.01, %v876_v32  ;;  %v879_v37 = vpop.f32.mrb[60].mxu1  ;;  %1391 = vmatmul.mubr.f32.gmra.mrb[120].mxu0 %v1074_v35  ;;  %vm949_vm10 = vcmp.gt.f32.partialorder %v876_v32, 0.0 }
 0x24b   :  { %v880_v38 = vadd.f32 %v879_v37, %v2908_v51  ;;  %v881_v39 = vpop.f32.mrb[61].mxu1  ;;  %v1076_v43 = vsel %vm948_vm11, %v874_v30, %v1012_v34 }
 0x24c   :  { %v882_v40 = vadd.f32 %v881_v39, %v2911_v53  ;;  %v1077_v41 = vsel %vm949_vm10, %v876_v32, %v1013_v36 }
 0x24d   :  { %v1014_v42 = vmul.f32 0.01, %v880_v38  ;;  %1396 = vmatprep.mubr.f32.mxu0 %v1077_v41  ;;  %vm950_vm13 = vcmp.gt.f32.partialorder %v880_v38, 0.0 }
 0x24e   :  { %v1015_v44 = vmul.f32 0.01, %v882_v40  ;;  %v885_v45 = vpop.f32.mrb[62].mxu1  ;;  %1397 = vmatmul.mubr.f32.gmra.mrb[122].mxu0 %v1076_v43  ;;  %vm951_vm12 = vcmp.gt.f32.partialorder %v882_v40, 0.0 }
 0x24f   :  { %v886_v13 = vadd.f32 %v885_v45, %v2908_v51  ;;  %v887_v16 = vpop.f32.mrb[63].mxu1  ;;  %v1078_v50 = vsel %vm950_vm13, %v880_v38, %v1014_v42  ;;  %v3094_v51 = vrot.slane %v1146_v46, %v2654_v7 }
 0x250   :  { %v888_v47 = vadd.f32 %v887_v16, %v2911_v53  ;;  %v1079_v48 = vsel %vm951_vm12, %v882_v40, %v1015_v44  ;;  %v3097_v53 = vrot.slane %v1146_v46, %v2659_v9 }
 0x251   :  { %v1016_v49 = vmul.f32 0.01, %v886_v13  ;;  %1402 = vmatprep.mubr.f32.mxu0 %v1079_v48  ;;  %vm952_vm15 = vcmp.gt.f32.partialorder %v886_v13, 0.0 }
 0x252   :  { %v1017_v52 = vmul.f32 0.01, %v888_v47  ;;  %1403 = vmatmul.mubr.f32.gmra.mrb[124].mxu0 %v1078_v50  ;;  %vm953_vm14 = vcmp.gt.f32.partialorder %v888_v47, 0.0 }
 0x253   :  { %v1080_v3 = vsel %vm952_vm15, %v886_v13, %v1016_v49 }
 0x254   :  { %v1081_v54 = vsel %vm953_vm14, %v888_v47, %v1017_v52 }
 0x255   :  { %1408 = vmatprep.mubr.f32.mxu0 %v1081_v54 }
 0x256   :  { %1409 = vmatmul.mubr.f32.gmra.mrb[126].mxu0 %v1080_v3 }
 0x2ad   :  { %v1224_v55 = vpop.f32.mrb[64].mxu0 }
 0x2ae   :  { %v1225_v56 = vadd.f32 %v1224_v55, %v3094_v51  ;;  %v1226_v57 = vpop.f32.mrb[65].mxu0 }
 0x2af   :  { %v1227_v58 = vadd.f32 %v1226_v57, %v3097_v53 }
 0x2b0   :  { %v1479_v59 = vmul.f32 0.01, %v1225_v56  ;;  %vm1415_vm0 = vcmp.gt.f32.partialorder %v1225_v56, 0.0 }
 0x2b1   :  { %v1480_v60 = vmul.f32 0.01, %v1227_v58  ;;  %v1230_v61 = vpop.f32.mrb[66].mxu0  ;;  %vm1416_vm1 = vcmp.gt.f32.partialorder %v1227_v58, 0.0 }
 0x2b2   :  { %v1231_v62 = vadd.f32 %v1230_v61, %v3094_v51  ;;  %v1232_v63 = vpop.f32.mrb[67].mxu0  ;;  %v1543_v1 = vsel %vm1415_vm0, %v1225_v56, %v1479_v59 }
 0x2b3   :  { %v1233_v7 = vadd.f32 %v1232_v63, %v3097_v53  ;;  %v1544_v0 = vsel %vm1416_vm1, %v1227_v58, %v1480_v60 }
 0x2b4   :  { %v1481_v9 = vmul.f32 0.01, %v1231_v62  ;;  %1710 = vmatprep.mubr.f32.mxu0 %v1544_v0  ;;  %vm1417_vm3 = vcmp.gt.f32.partialorder %v1231_v62, 0.0 }
 0x2b5   :  { %v1482_v2 = vmul.f32 0.01, %v1233_v7  ;;  %v1236_v4 = vpop.f32.mrb[68].mxu0  ;;  %1711 = vmatmul.mubr.f32.vlgmr.msra.gmra.mrb[128].mxu0 %v1543_v1  ;;  %vm1418_vm2 = vcmp.gt.f32.partialorder %v1233_v7, 0.0 }
 0x2b6   :  { %v1237_v5 = vadd.f32 %v1236_v4, %v3094_v51  ;;  %v1238_v6 = vpop.f32.mrb[69].mxu0  ;;  %v1545_v12 = vsel %vm1417_vm3, %v1231_v62, %v1481_v9 }
 0x2b7   :  { %v1239_v8 = vadd.f32 %v1238_v6, %v3097_v53  ;;  %v1546_v10 = vsel %vm1418_vm2, %v1233_v7, %v1482_v2 }
 0x2b8   :  { %v1483_v11 = vmul.f32 0.01, %v1237_v5  ;;  %1715 = vmatprep.mubr.f32.mxu0 %v1546_v10  ;;  %vm1419_vm5 = vcmp.gt.f32.partialorder %v1237_v5, 0.0 }
 0x2b9   :  { %v1484_v14 = vmul.f32 0.01, %v1239_v8  ;;  %v1242_v15 = vpop.f32.mrb[70].mxu0  ;;  %1716 = vmatmul.mubr.f32.gmra.mrb[130].mxu0 %v1545_v12  ;;  %vm1420_vm4 = vcmp.gt.f32.partialorder %v1239_v8, 0.0 }
 0x2ba   :  { %v1243_v17 = vadd.f32 %v1242_v15, %v3094_v51  ;;  %v1244_v18 = vpop.f32.mrb[71].mxu0  ;;  %v1547_v22 = vsel %vm1419_vm5, %v1237_v5, %v1483_v11 }
 0x2bb   :  { %v1245_v19 = vadd.f32 %v1244_v18, %v3097_v53  ;;  %v1548_v20 = vsel %vm1420_vm4, %v1239_v8, %v1484_v14 }
 0x2bc   :  { %v1485_v21 = vmul.f32 0.01, %v1243_v17  ;;  %1720 = vmatprep.mubr.f32.mxu0 %v1548_v20  ;;  %vm1421_vm7 = vcmp.gt.f32.partialorder %v1243_v17, 0.0 }
 0x2bd   :  { %v1486_v23 = vmul.f32 0.01, %v1245_v19  ;;  %v1248_v24 = vpop.f32.mrb[72].mxu0  ;;  %1721 = vmatmul.mubr.f32.gmra.mrb[132].mxu0 %v1547_v22  ;;  %vm1422_vm6 = vcmp.gt.f32.partialorder %v1245_v19, 0.0 }
 0x2be   :  { %v1249_v25 = vadd.f32 %v1248_v24, %v3094_v51  ;;  %v1250_v26 = vpop.f32.mrb[73].mxu0  ;;  %v1549_v30 = vsel %vm1421_vm7, %v1243_v17, %v1485_v21 }
 0x2bf   :  { %v1251_v27 = vadd.f32 %v1250_v26, %v3097_v53  ;;  %v1550_v28 = vsel %vm1422_vm6, %v1245_v19, %v1486_v23 }
 0x2c0   :  { %v1487_v29 = vmul.f32 0.01, %v1249_v25  ;;  %1725 = vmatprep.mubr.f32.mxu0 %v1550_v28  ;;  %vm1423_vm8 = vcmp.gt.f32.partialorder %v1249_v25, 0.0 }
 0x2c1   :  { %v1488_v31 = vmul.f32 0.01, %v1251_v27  ;;  %v1254_v32 = vpop.f32.mrb[74].mxu0  ;;  %1726 = vmatmul.mubr.f32.gmra.mrb[134].mxu0 %v1549_v30  ;;  %vm1424_vm9 = vcmp.gt.f32.partialorder %v1251_v27, 0.0 }
 0x2c2   :  { %v1255_v33 = vadd.f32 %v1254_v32, %v3094_v51  ;;  %v1256_v34 = vpop.f32.mrb[75].mxu0  ;;  %v1551_v37 = vsel %vm1423_vm8, %v1249_v25, %v1487_v29 }
 0x2c3   :  { %v1257_v35 = vadd.f32 %v1256_v34, %v3097_v53  ;;  %v1552_v36 = vsel %vm1424_vm9, %v1251_v27, %v1488_v31 }
 0x2c4   :  { %v1489_v38 = vmul.f32 0.01, %v1255_v33  ;;  %1730 = vmatprep.mubr.f32.mxu1 %v1552_v36  ;;  %vm1425_vm11 = vcmp.gt.f32.partialorder %v1255_v33, 0.0 }
 0x2c5   :  { %v1490_v39 = vmul.f32 0.01, %v1257_v35  ;;  %v1260_v40 = vpop.f32.mrb[76].mxu0  ;;  %1731 = vmatmul.mubr.f32.vlgmr.msra.gmra.mrb[64].mxu1 %v1551_v37  ;;  %vm1426_vm10 = vcmp.gt.f32.partialorder %v1257_v35, 0.0 }
 0x2c6   :  { %v1261_v41 = vadd.f32 %v1260_v40, %v3094_v51  ;;  %v1262_v42 = vpop.f32.mrb[77].mxu0  ;;  %v1553_v13 = vsel %vm1425_vm11, %v1255_v33, %v1489_v38 }
 0x2c7   :  { %v1263_v43 = vadd.f32 %v1262_v42, %v3097_v53  ;;  %v1554_v44 = vsel %vm1426_vm10, %v1257_v35, %v1490_v39 }
 0x2c8   :  { %v1491_v45 = vmul.f32 0.01, %v1261_v41  ;;  %1735 = vmatprep.mubr.f32.mxu1 %v1554_v44  ;;  %vm1427_vm13 = vcmp.gt.f32.partialorder %v1261_v41, 0.0 }
 0x2c9   :  { %v1492_v16 = vmul.f32 0.01, %v1263_v43  ;;  %v1266_v47 = vpop.f32.mrb[78].mxu0  ;;  %1736 = vmatmul.mubr.f32.gmra.mrb[66].mxu1 %v1553_v13  ;;  %vm1428_vm12 = vcmp.gt.f32.partialorder %v1263_v43, 0.0 }
 0x2ca   :  { %v1267_v48 = vadd.f32 %v1266_v47, %v3094_v51  ;;  %v1268_v49 = vpop.f32.mrb[79].mxu0  ;;  %v1555_v3 = vsel %vm1427_vm13, %v1261_v41, %v1491_v45 }
 0x2cb   :  { %v1269_v50 = vadd.f32 %v1268_v49, %v3097_v53  ;;  %v1556_v52 = vsel %vm1428_vm12, %v1263_v43, %v1492_v16 }
 0x2cc   :  { %v1493_v54 = vmul.f32 0.01, %v1267_v48  ;;  %1740 = vmatprep.mubr.f32.mxu1 %v1556_v52  ;;  %vm1429_vm15 = vcmp.gt.f32.partialorder %v1267_v48, 0.0 }
 0x2cd   :  { %v1494_v46 = vmul.f32 0.01, %v1269_v50  ;;  %v1272_v55 = vpop.f32.mrb[80].mxu0  ;;  %1741 = vmatmul.mubr.f32.gmra.mrb[68].mxu1 %v1555_v3  ;;  %vm1430_vm14 = vcmp.gt.f32.partialorder %v1269_v50, 0.0 }
 0x2ce   :  { %v1273_v56 = vadd.f32 %v1272_v55, %v3094_v51  ;;  %v1274_v57 = vpop.f32.mrb[81].mxu0  ;;  %v1557_v61 = vsel %vm1429_vm15, %v1267_v48, %v1493_v54 }
 0x2cf   :  { %v1275_v58 = vadd.f32 %v1274_v57, %v3097_v53  ;;  %v1558_v59 = vsel %vm1430_vm14, %v1269_v50, %v1494_v46 }
 0x2d0   :  { %v1495_v60 = vmul.f32 0.01, %v1273_v56  ;;  %1745 = vmatprep.mubr.f32.mxu1 %v1558_v59  ;;  %vm1431_vm1 = vcmp.gt.f32.partialorder %v1273_v56, 0.0 }
 0x2d1   :  { %v1496_v62 = vmul.f32 0.01, %v1275_v58  ;;  %v1278_v63 = vpop.f32.mrb[82].mxu0  ;;  %1746 = vmatmul.mubr.f32.gmra.mrb[70].mxu1 %v1557_v61  ;;  %vm1432_vm0 = vcmp.gt.f32.partialorder %v1275_v58, 0.0 }
 0x2d2   :  { %v1279_v7 = vadd.f32 %v1278_v63, %v3094_v51  ;;  %v1280_v0 = vpop.f32.mrb[83].mxu0  ;;  %v1559_v4 = vsel %vm1431_vm1, %v1273_v56, %v1495_v60 }
 0x2d3   :  { %v1281_v1 = vadd.f32 %v1280_v0, %v3097_v53  ;;  %v1560_v9 = vsel %vm1432_vm0, %v1275_v58, %v1496_v62 }
 0x2d4   :  { %v1497_v2 = vmul.f32 0.01, %v1279_v7  ;;  %1750 = vmatprep.mubr.f32.mxu1 %v1560_v9  ;;  %vm1433_vm3 = vcmp.gt.f32.partialorder %v1279_v7, 0.0 }
 0x2d5   :  { %v1498_v5 = vmul.f32 0.01, %v1281_v1  ;;  %v1284_v6 = vpop.f32.mrb[84].mxu0  ;;  %1751 = vmatmul.mubr.f32.gmra.mrb[72].mxu1 %v1559_v4  ;;  %vm1434_vm2 = vcmp.gt.f32.partialorder %v1281_v1, 0.0 }
 0x2d6   :  { %v1285_v8 = vadd.f32 %v1284_v6, %v3094_v51  ;;  %v1286_v10 = vpop.f32.mrb[85].mxu0  ;;  %v1561_v15 = vsel %vm1433_vm3, %v1279_v7, %v1497_v2 }
 0x2d7   :  { %v1287_v11 = vadd.f32 %v1286_v10, %v3097_v53  ;;  %v1562_v12 = vsel %vm1434_vm2, %v1281_v1, %v1498_v5 }
 0x2d8   :  { %v1499_v14 = vmul.f32 0.01, %v1285_v8  ;;  %1755 = vmatprep.mubr.f32.mxu1 %v1562_v12  ;;  %vm1435_vm5 = vcmp.gt.f32.partialorder %v1285_v8, 0.0 }
 0x2d9   :  { %v1500_v17 = vmul.f32 0.01, %v1287_v11  ;;  %v1290_v18 = vpop.f32.mrb[86].mxu0  ;;  %1756 = vmatmul.mubr.f32.gmra.mrb[74].mxu1 %v1561_v15  ;;  %vm1436_vm4 = vcmp.gt.f32.partialorder %v1287_v11, 0.0 }
 0x2da   :  { %v1291_v19 = vadd.f32 %v1290_v18, %v3094_v51  ;;  %v1292_v20 = vpop.f32.mrb[87].mxu0  ;;  %v1563_v24 = vsel %vm1435_vm5, %v1285_v8, %v1499_v14 }
 0x2db   :  { %v1293_v21 = vadd.f32 %v1292_v20, %v3097_v53  ;;  %v1564_v22 = vsel %vm1436_vm4, %v1287_v11, %v1500_v17 }
 0x2dc   :  { %v1501_v23 = vmul.f32 0.01, %v1291_v19  ;;  %1760 = vmatprep.mubr.f32.mxu1 %v1564_v22  ;;  %vm1437_vm7 = vcmp.gt.f32.partialorder %v1291_v19, 0.0 }
 0x2dd   :  { %v1502_v25 = vmul.f32 0.01, %v1293_v21  ;;  %v1296_v26 = vpop.f32.mrb[88].mxu0  ;;  %1761 = vmatmul.mubr.f32.gmra.mrb[76].mxu1 %v1563_v24  ;;  %vm1438_vm6 = vcmp.gt.f32.partialorder %v1293_v21, 0.0 }
 0x2de   :  { %v1297_v27 = vadd.f32 %v1296_v26, %v3094_v51  ;;  %v1298_v28 = vpop.f32.mrb[89].mxu0  ;;  %v1565_v32 = vsel %vm1437_vm7, %v1291_v19, %v1501_v23 }
 0x2df   :  { %v1299_v29 = vadd.f32 %v1298_v28, %v3097_v53  ;;  %v1566_v30 = vsel %vm1438_vm6, %v1293_v21, %v1502_v25 }
 0x2e0   :  { %v1503_v31 = vmul.f32 0.01, %v1297_v27  ;;  %1765 = vmatprep.mubr.f32.mxu1 %v1566_v30  ;;  %vm1439_vm9 = vcmp.gt.f32.partialorder %v1297_v27, 0.0 }
 0x2e1   :  { %v1504_v33 = vmul.f32 0.01, %v1299_v29  ;;  %v1302_v34 = vpop.f32.mrb[90].mxu0  ;;  %1766 = vmatmul.mubr.f32.gmra.mrb[78].mxu1 %v1565_v32  ;;  %vm1440_vm8 = vcmp.gt.f32.partialorder %v1299_v29, 0.0 }
 0x2e2   :  { %v1303_v35 = vadd.f32 %v1302_v34, %v3094_v51  ;;  %v1304_v36 = vpop.f32.mrb[91].mxu0  ;;  %v1567_v40 = vsel %vm1439_vm9, %v1297_v27, %v1503_v31 }
 0x2e3   :  { %v1305_v37 = vadd.f32 %v1304_v36, %v3097_v53  ;;  %v1568_v38 = vsel %vm1440_vm8, %v1299_v29, %v1504_v33 }
 0x2e4   :  { %v1505_v39 = vmul.f32 0.01, %v1303_v35  ;;  %1770 = vmatprep.mubr.f32.mxu1 %v1568_v38  ;;  %vm1441_vm11 = vcmp.gt.f32.partialorder %v1303_v35, 0.0 }
 0x2e5   :  { %v1506_v41 = vmul.f32 0.01, %v1305_v37  ;;  %v1308_v42 = vpop.f32.mrb[92].mxu0  ;;  %1771 = vmatmul.mubr.f32.gmra.mrb[80].mxu1 %v1567_v40  ;;  %vm1442_vm10 = vcmp.gt.f32.partialorder %v1305_v37, 0.0 }
 0x2e6   :  { %v1309_v43 = vadd.f32 %v1308_v42, %v3094_v51  ;;  %v1310_v44 = vpop.f32.mrb[93].mxu0  ;;  %v1569_v47 = vsel %vm1441_vm11, %v1303_v35, %v1505_v39 }
 0x2e7   :  { %v1311_v45 = vadd.f32 %v1310_v44, %v3097_v53  ;;  %v1570_v13 = vsel %vm1442_vm10, %v1305_v37, %v1506_v41 }
 0x2e8   :  { %v1507_v16 = vmul.f32 0.01, %v1309_v43  ;;  %1775 = vmatprep.mubr.f32.mxu1 %v1570_v13  ;;  %vm1443_vm13 = vcmp.gt.f32.partialorder %v1309_v43, 0.0 }
 0x2e9   :  { %v1508_v48 = vmul.f32 0.01, %v1311_v45  ;;  %v1314_v49 = vpop.f32.mrb[94].mxu0  ;;  %1776 = vmatmul.mubr.f32.gmra.mrb[82].mxu1 %v1569_v47  ;;  %vm1444_vm12 = vcmp.gt.f32.partialorder %v1311_v45, 0.0 }
 0x2ea   :  { %v1315_v50 = vadd.f32 %v1314_v49, %v3094_v51  ;;  %v1316_v52 = vpop.f32.mrb[95].mxu0  ;;  %v1571_v55 = vsel %vm1443_vm13, %v1309_v43, %v1507_v16 }
 0x2eb   :  { %v1317_v54 = vadd.f32 %v1316_v52, %v3097_v53  ;;  %v1572_v3 = vsel %vm1444_vm12, %v1311_v45, %v1508_v48 }
 0x2ec   :  { %v1509_v46 = vmul.f32 0.01, %v1315_v50  ;;  %1780 = vmatprep.mubr.f32.mxu1 %v1572_v3  ;;  %vm1445_vm15 = vcmp.gt.f32.partialorder %v1315_v50, 0.0 }
 0x2ed   :  { %v1510_v56 = vmul.f32 0.01, %v1317_v54  ;;  %v1320_v57 = vpop.f32.mrb[96].mxu0  ;;  %1781 = vmatmul.mubr.f32.gmra.mrb[84].mxu1 %v1571_v55  ;;  %vm1446_vm14 = vcmp.gt.f32.partialorder %v1317_v54, 0.0 }
 0x2ee   :  { %v1321_v58 = vadd.f32 %v1320_v57, %v3094_v51  ;;  %v1322_v59 = vpop.f32.mrb[97].mxu0  ;;  %v1573_v63 = vsel %vm1445_vm15, %v1315_v50, %v1509_v46 }
 0x2ef   :  { %v1323_v60 = vadd.f32 %v1322_v59, %v3097_v53  ;;  %v1574_v61 = vsel %vm1446_vm14, %v1317_v54, %v1510_v56 }
 0x2f0   :  { %v1511_v62 = vmul.f32 0.01, %v1321_v58  ;;  %1785 = vmatprep.mubr.f32.mxu1 %v1574_v61  ;;  %vm1447_vm1 = vcmp.gt.f32.partialorder %v1321_v58, 0.0 }
 0x2f1   :  { %v1512_v7 = vmul.f32 0.01, %v1323_v60  ;;  %v1326_v0 = vpop.f32.mrb[98].mxu0  ;;  %1786 = vmatmul.mubr.f32.gmra.mrb[86].mxu1 %v1573_v63  ;;  %vm1448_vm0 = vcmp.gt.f32.partialorder %v1323_v60, 0.0 }
 0x2f2   :  { %v1327_v1 = vadd.f32 %v1326_v0, %v3094_v51  ;;  %v1328_v9 = vpop.f32.mrb[99].mxu0  ;;  %v1575_v6 = vsel %vm1447_vm1, %v1321_v58, %v1511_v62 }
 0x2f3   :  { %v1329_v2 = vadd.f32 %v1328_v9, %v3097_v53  ;;  %v1576_v4 = vsel %vm1448_vm0, %v1323_v60, %v1512_v7 }
 0x2f4   :  { %v1513_v5 = vmul.f32 0.01, %v1327_v1  ;;  %1790 = vmatprep.mubr.f32.mxu1 %v1576_v4  ;;  %vm1449_vm3 = vcmp.gt.f32.partialorder %v1327_v1, 0.0 }
 0x2f5   :  { %v1514_v8 = vmul.f32 0.01, %v1329_v2  ;;  %v1332_v10 = vpop.f32.mrb[100].mxu0  ;;  %1791 = vmatmul.mubr.f32.gmra.mrb[88].mxu1 %v1575_v6  ;;  %vm1450_vm2 = vcmp.gt.f32.partialorder %v1329_v2, 0.0 }
 0x2f6   :  { %v1333_v11 = vadd.f32 %v1332_v10, %v3094_v51  ;;  %v1334_v12 = vpop.f32.mrb[101].mxu0  ;;  %v1577_v18 = vsel %vm1449_vm3, %v1327_v1, %v1513_v5 }
 0x2f7   :  { %v1335_v14 = vadd.f32 %v1334_v12, %v3097_v53  ;;  %v1578_v15 = vsel %vm1450_vm2, %v1329_v2, %v1514_v8 }
 0x2f8   :  { %v1515_v17 = vmul.f32 0.01, %v1333_v11  ;;  %1795 = vmatprep.mubr.f32.mxu1 %v1578_v15  ;;  %vm1451_vm5 = vcmp.gt.f32.partialorder %v1333_v11, 0.0 }
 0x2f9   :  { %v1516_v19 = vmul.f32 0.01, %v1335_v14  ;;  %v1338_v20 = vpop.f32.mrb[102].mxu0  ;;  %1796 = vmatmul.mubr.f32.gmra.mrb[90].mxu1 %v1577_v18  ;;  %vm1452_vm4 = vcmp.gt.f32.partialorder %v1335_v14, 0.0 }
 0x2fa   :  { %v1339_v21 = vadd.f32 %v1338_v20, %v3094_v51  ;;  %v1340_v22 = vpop.f32.mrb[103].mxu0  ;;  %v1579_v26 = vsel %vm1451_vm5, %v1333_v11, %v1515_v17 }
 0x2fb   :  { %v1341_v23 = vadd.f32 %v1340_v22, %v3097_v53  ;;  %v1580_v24 = vsel %vm1452_vm4, %v1335_v14, %v1516_v19 }
 0x2fc   :  { %v1517_v25 = vmul.f32 0.01, %v1339_v21  ;;  %1800 = vmatprep.mubr.f32.mxu1 %v1580_v24  ;;  %vm1453_vm7 = vcmp.gt.f32.partialorder %v1339_v21, 0.0 }
 0x2fd   :  { %v1518_v27 = vmul.f32 0.01, %v1341_v23  ;;  %v1344_v28 = vpop.f32.mrb[104].mxu0  ;;  %1801 = vmatmul.mubr.f32.gmra.mrb[92].mxu1 %v1579_v26  ;;  %vm1454_vm6 = vcmp.gt.f32.partialorder %v1341_v23, 0.0 }
 0x2fe   :  { %v1345_v29 = vadd.f32 %v1344_v28, %v3094_v51  ;;  %v1346_v30 = vpop.f32.mrb[105].mxu0  ;;  %v1581_v34 = vsel %vm1453_vm7, %v1339_v21, %v1517_v25 }
 0x2ff   :  { %v1347_v31 = vadd.f32 %v1346_v30, %v3097_v53  ;;  %v1582_v32 = vsel %vm1454_vm6, %v1341_v23, %v1518_v27 }
 0x300   :  { %v1519_v33 = vmul.f32 0.01, %v1345_v29  ;;  %1805 = vmatprep.mubr.f32.mxu1 %v1582_v32  ;;  %vm1455_vm9 = vcmp.gt.f32.partialorder %v1345_v29, 0.0 }
 0x301   :  { %v1520_v35 = vmul.f32 0.01, %v1347_v31  ;;  %v1350_v36 = vpop.f32.mrb[106].mxu0  ;;  %1806 = vmatmul.mubr.f32.gmra.mrb[94].mxu1 %v1581_v34  ;;  %vm1456_vm8 = vcmp.gt.f32.partialorder %v1347_v31, 0.0 }
 0x302   :  { %v1351_v37 = vadd.f32 %v1350_v36, %v3094_v51  ;;  %v1352_v38 = vpop.f32.mrb[107].mxu0  ;;  %v1583_v42 = vsel %vm1455_vm9, %v1345_v29, %v1519_v33 }
 0x303   :  { %v1353_v39 = vadd.f32 %v1352_v38, %v3097_v53  ;;  %v1584_v40 = vsel %vm1456_vm8, %v1347_v31, %v1520_v35 }
 0x304   :  { %v1521_v41 = vmul.f32 0.01, %v1351_v37  ;;  %1810 = vmatprep.mubr.f32.mxu1 %v1584_v40  ;;  %vm1457_vm11 = vcmp.gt.f32.partialorder %v1351_v37, 0.0 }
 0x305   :  { %v1522_v43 = vmul.f32 0.01, %v1353_v39  ;;  %v1356_v44 = vpop.f32.mrb[108].mxu0  ;;  %1811 = vmatmul.mubr.f32.gmra.mrb[96].mxu1 %v1583_v42  ;;  %vm1458_vm10 = vcmp.gt.f32.partialorder %v1353_v39, 0.0 }
 0x306   :  { %v1357_v45 = vadd.f32 %v1356_v44, %v3094_v51  ;;  %v1358_v13 = vpop.f32.mrb[109].mxu0  ;;  %v1585_v49 = vsel %vm1457_vm11, %v1351_v37, %v1521_v41 }
 0x307   :  { %v1359_v16 = vadd.f32 %v1358_v13, %v3097_v53  ;;  %v1586_v47 = vsel %vm1458_vm10, %v1353_v39, %v1522_v43 }
 0x308   :  { %v1523_v48 = vmul.f32 0.01, %v1357_v45  ;;  %1815 = vmatprep.mubr.f32.mxu1 %v1586_v47  ;;  %vm1459_vm13 = vcmp.gt.f32.partialorder %v1357_v45, 0.0 }
 0x309   :  { %v1524_v50 = vmul.f32 0.01, %v1359_v16  ;;  %v1362_v52 = vpop.f32.mrb[110].mxu0  ;;  %1816 = vmatmul.mubr.f32.gmra.mrb[98].mxu1 %v1585_v49  ;;  %vm1460_vm12 = vcmp.gt.f32.partialorder %v1359_v16, 0.0 }
 0x30a   :  { %v1363_v54 = vadd.f32 %v1362_v52, %v3094_v51  ;;  %v1364_v3 = vpop.f32.mrb[111].mxu0  ;;  %v1587_v57 = vsel %vm1459_vm13, %v1357_v45, %v1523_v48 }
 0x30b   :  { %v1365_v46 = vadd.f32 %v1364_v3, %v3097_v53  ;;  %v1588_v55 = vsel %vm1460_vm12, %v1359_v16, %v1524_v50 }
 0x30c   :  { %v1525_v56 = vmul.f32 0.01, %v1363_v54  ;;  %1820 = vmatprep.mubr.f32.mxu1 %v1588_v55  ;;  %vm1461_vm15 = vcmp.gt.f32.partialorder %v1363_v54, 0.0 }
 0x30d   :  { %v1526_v58 = vmul.f32 0.01, %v1365_v46  ;;  %v1368_v59 = vpop.f32.mrb[112].mxu0  ;;  %1821 = vmatmul.mubr.f32.gmra.mrb[100].mxu1 %v1587_v57  ;;  %vm1462_vm14 = vcmp.gt.f32.partialorder %v1365_v46, 0.0 }
 0x30e   :  { %v1369_v60 = vadd.f32 %v1368_v59, %v3094_v51  ;;  %v1370_v61 = vpop.f32.mrb[113].mxu0  ;;  %v1589_v0 = vsel %vm1461_vm15, %v1363_v54, %v1525_v56 }
 0x30f   :  { %v1371_v62 = vadd.f32 %v1370_v61, %v3097_v53  ;;  %v1590_v63 = vsel %vm1462_vm14, %v1365_v46, %v1526_v58 }
 0x310   :  { %v1527_v7 = vmul.f32 0.01, %v1369_v60  ;;  %1825 = vmatprep.mubr.f32.mxu1 %v1590_v63  ;;  %vm1463_vm1 = vcmp.gt.f32.partialorder %v1369_v60, 0.0  ;;  %v3166_v63 = vld [vmem:[%s3304_s8] ss:$0 sm:$0xff] }
 0x311   :  { %v1528_v1 = vmul.f32 0.01, %v1371_v62  ;;  %v1374_v9 = vpop.f32.mrb[114].mxu0  ;;  %1826 = vmatmul.mubr.f32.gmra.mrb[102].mxu1 %v1589_v0  ;;  %vm1464_vm0 = vcmp.gt.f32.partialorder %v1371_v62, 0.0 }
 0x312   :  { %v1375_v2 = vadd.f32 %v1374_v9, %v3094_v51  ;;  %v1376_v4 = vpop.f32.mrb[115].mxu0  ;;  %v1591_v10 = vsel %vm1463_vm1, %v1369_v60, %v1527_v7 }
 0x313   :  { %v1377_v5 = vadd.f32 %v1376_v4, %v3097_v53  ;;  %v1592_v6 = vsel %vm1464_vm0, %v1371_v62, %v1528_v1 }
 0x314   :  { %v1529_v8 = vmul.f32 0.01, %v1375_v2  ;;  %1830 = vmatprep.mubr.f32.mxu1 %v1592_v6  ;;  %vm1465_vm3 = vcmp.gt.f32.partialorder %v1375_v2, 0.0 }
 0x315   :  { %v1530_v11 = vmul.f32 0.01, %v1377_v5  ;;  %v1380_v12 = vpop.f32.mrb[116].mxu0  ;;  %1831 = vmatmul.mubr.f32.gmra.mrb[104].mxu1 %v1591_v10  ;;  %vm1466_vm2 = vcmp.gt.f32.partialorder %v1377_v5, 0.0 }
 0x316   :  { %v1381_v14 = vadd.f32 %v1380_v12, %v3094_v51  ;;  %v1382_v15 = vpop.f32.mrb[117].mxu0  ;;  %v1593_v20 = vsel %vm1465_vm3, %v1375_v2, %v1529_v8 }
 0x317   :  { %v1383_v17 = vadd.f32 %v1382_v15, %v3097_v53  ;;  %v1594_v18 = vsel %vm1466_vm2, %v1377_v5, %v1530_v11 }
 0x318   :  { %v1531_v19 = vmul.f32 0.01, %v1381_v14  ;;  %1835 = vmatprep.mubr.f32.mxu1 %v1594_v18  ;;  %vm1467_vm5 = vcmp.gt.f32.partialorder %v1381_v14, 0.0 }
 0x319   :  { %v1532_v21 = vmul.f32 0.01, %v1383_v17  ;;  %v1386_v22 = vpop.f32.mrb[118].mxu0  ;;  %1836 = vmatmul.mubr.f32.gmra.mrb[106].mxu1 %v1593_v20  ;;  %vm1468_vm4 = vcmp.gt.f32.partialorder %v1383_v17, 0.0 }
 0x31a   :  { %v1387_v23 = vadd.f32 %v1386_v22, %v3094_v51  ;;  %v1388_v24 = vpop.f32.mrb[119].mxu0  ;;  %v1595_v28 = vsel %vm1467_vm5, %v1381_v14, %v1531_v19 }
 0x31b   :  { %v1389_v25 = vadd.f32 %v1388_v24, %v3097_v53  ;;  %v1596_v26 = vsel %vm1468_vm4, %v1383_v17, %v1532_v21 }
 0x31c   :  { %v1533_v27 = vmul.f32 0.01, %v1387_v23  ;;  %1840 = vmatprep.mubr.f32.mxu1 %v1596_v26  ;;  %vm1469_vm7 = vcmp.gt.f32.partialorder %v1387_v23, 0.0 }
 0x31d   :  { %v1534_v29 = vmul.f32 0.01, %v1389_v25  ;;  %v1392_v30 = vpop.f32.mrb[120].mxu0  ;;  %1841 = vmatmul.mubr.f32.gmra.mrb[108].mxu1 %v1595_v28  ;;  %vm1470_vm6 = vcmp.gt.f32.partialorder %v1389_v25, 0.0 }
 0x31e   :  { %v1393_v31 = vadd.f32 %v1392_v30, %v3094_v51  ;;  %v1394_v32 = vpop.f32.mrb[121].mxu0  ;;  %v1597_v36 = vsel %vm1469_vm7, %v1387_v23, %v1533_v27 }
 0x31f   :  { %v1395_v33 = vadd.f32 %v1394_v32, %v3097_v53  ;;  %v1598_v34 = vsel %vm1470_vm6, %v1389_v25, %v1534_v29 }
 0x320   :  { %v1535_v35 = vmul.f32 0.01, %v1393_v31  ;;  %1845 = vmatprep.mubr.f32.mxu1 %v1598_v34  ;;  %vm1471_vm9 = vcmp.gt.f32.partialorder %v1393_v31, 0.0 }
 0x321   :  { %v1536_v37 = vmul.f32 0.01, %v1395_v33  ;;  %v1398_v38 = vpop.f32.mrb[122].mxu0  ;;  %1846 = vmatmul.mubr.f32.gmra.mrb[110].mxu1 %v1597_v36  ;;  %vm1472_vm8 = vcmp.gt.f32.partialorder %v1395_v33, 0.0 }
 0x322   :  { %v1399_v39 = vadd.f32 %v1398_v38, %v3094_v51  ;;  %v1400_v40 = vpop.f32.mrb[123].mxu0  ;;  %v1599_v44 = vsel %vm1471_vm9, %v1393_v31, %v1535_v35 }
 0x323   :  { %v1401_v41 = vadd.f32 %v1400_v40, %v3097_v53  ;;  %v1600_v42 = vsel %vm1472_vm8, %v1395_v33, %v1536_v37 }
 0x324   :  { %v1537_v43 = vmul.f32 0.01, %v1399_v39  ;;  %1850 = vmatprep.mubr.f32.mxu1 %v1600_v42  ;;  %vm1473_vm11 = vcmp.gt.f32.partialorder %v1399_v39, 0.0 }
 0x325   :  { %v1538_v45 = vmul.f32 0.01, %v1401_v41  ;;  %v1404_v13 = vpop.f32.mrb[124].mxu0  ;;  %1851 = vmatmul.mubr.f32.gmra.mrb[112].mxu1 %v1599_v44  ;;  %vm1474_vm10 = vcmp.gt.f32.partialorder %v1401_v41, 0.0 }
 0x326   :  { %v1405_v16 = vadd.f32 %v1404_v13, %v3094_v51  ;;  %v1406_v47 = vpop.f32.mrb[125].mxu0  ;;  %v1601_v52 = vsel %vm1473_vm11, %v1399_v39, %v1537_v43 }
 0x327   :  { %v1407_v48 = vadd.f32 %v1406_v47, %v3097_v53  ;;  %v1602_v49 = vsel %vm1474_vm10, %v1401_v41, %v1538_v45 }
 0x328   :  { %v1539_v50 = vmul.f32 0.01, %v1405_v16  ;;  %1855 = vmatprep.mubr.f32.mxu1 %v1602_v49  ;;  %vm1475_vm13 = vcmp.gt.f32.partialorder %v1405_v16, 0.0 }
 0x329   :  { %v1540_v54 = vmul.f32 0.01, %v1407_v48  ;;  %v1410_v3 = vpop.f32.mrb[126].mxu0  ;;  %1856 = vmatmul.mubr.f32.gmra.mrb[114].mxu1 %v1601_v52  ;;  %vm1476_vm12 = vcmp.gt.f32.partialorder %v1407_v48, 0.0 }
 0x32a   :  { %v1411_v46 = vadd.f32 %v1410_v3, %v3094_v51  ;;  %v1412_v55 = vpop.f32.mrb[127].mxu0  ;;  %v1603_v59 = vsel %vm1475_vm13, %v1405_v16, %v1539_v50 }
 0x32b   :  { %v1413_v56 = vadd.f32 %v1412_v55, %v3097_v53  ;;  %v1604_v57 = vsel %vm1476_vm12, %v1407_v48, %v1540_v54 }
 0x32c   :  { %v1541_v58 = vmul.f32 0.01, %v1411_v46  ;;  %1860 = vmatprep.mubr.f32.mxu1 %v1604_v57  ;;  %vm1477_vm15 = vcmp.gt.f32.partialorder %v1411_v46, 0.0 }
 0x32d   :  { %v1542_v60 = vmul.f32 0.01, %v1413_v56  ;;  %1861 = vmatmul.mubr.f32.gmra.mrb[116].mxu1 %v1603_v59  ;;  %vm1478_vm14 = vcmp.gt.f32.partialorder %v1413_v56, 0.0 }
 0x32e   :  { %v1605_v62 = vsel %vm1477_vm15, %v1411_v46, %v1541_v58 }
 0x32f   :  { %v1606_v61 = vsel %vm1478_vm14, %v1413_v56, %v1542_v60 }
 0x330   :  { %1865 = vmatprep.mubr.f32.mxu1 %v1606_v61 }
 0x331   :  { %1866 = vmatmul.mubr.f32.gmra.mrb[118].mxu1 %v1605_v62 }
 0x388   :  { %v1712_v51 = vpop.f32.mrb[128].mxu0 }
 0x389   :  { %v1713_v53 = vadd.f32 %v3166_v63, %v1712_v51  ;;  %v1714_v7 = vpop.f32.mrb[129].mxu0 }
 0x38b   :  { %1871 = vst [vmem:[%s3305_s9] sm:$0xff] %v1713_v53 }
 0x38c   :  { %v1717_v0 = vpop.f32.mrb[130].mxu0 }
 0x38d   :  { %v1718_v1 = vadd.f32 %v3166_v63, %v1717_v0  ;;  %v1719_v9 = vpop.f32.mrb[131].mxu0 }
 0x38f   :  { %1872 = vst [vmem:[%s3305_s9 + $0x8] sm:$0xff] %v1718_v1 }
 0x390   :  { %v1722_v2 = vpop.f32.mrb[132].mxu0 }
 0x391   :  { %v1723_v4 = vadd.f32 %v3166_v63, %v1722_v2  ;;  %v1724_v5 = vpop.f32.mrb[133].mxu0 }
 0x393   :  { %1873 = vst [vmem:[%s3305_s9 + $0x10] sm:$0xff] %v1723_v4 }
 0x394   :  { %v1727_v6 = vpop.f32.mrb[134].mxu0 }
 0x395   :  { %v1728_v8 = vadd.f32 %v3166_v63, %v1727_v6  ;;  %v1729_v10 = vpop.f32.mrb[135].mxu0 }
 0x397   :  { %1874 = vst [vmem:[%s3305_s9 + $0x18] sm:$0xff] %v1728_v8 }
 0x398   :  { %v1732_v11 = vpop.f32.mrb[64].mxu1 }
 0x399   :  { %v1733_v12 = vadd.f32 %v3166_v63, %v1732_v11  ;;  %v1734_v14 = vpop.f32.mrb[65].mxu1 }
 0x39b   :  { %1875 = vst [vmem:[%s3305_s9 + $0x20] sm:$0xff] %v1733_v12 }
 0x39c   :  { %v1737_v15 = vpop.f32.mrb[66].mxu1 }
 0x39d   :  { %v1738_v17 = vadd.f32 %v3166_v63, %v1737_v15  ;;  %v1739_v18 = vpop.f32.mrb[67].mxu1 }
 0x39f   :  { %1876 = vst [vmem:[%s3305_s9 + $0x28] sm:$0xff] %v1738_v17 }
 0x3a0   :  { %v1742_v19 = vpop.f32.mrb[68].mxu1 }
 0x3a1   :  { %v1743_v20 = vadd.f32 %v3166_v63, %v1742_v19  ;;  %v1744_v21 = vpop.f32.mrb[69].mxu1 }
 0x3a3   :  { %1877 = vst [vmem:[%s3305_s9 + $0x30] sm:$0xff] %v1743_v20 }
 0x3a4   :  { %v1747_v22 = vpop.f32.mrb[70].mxu1 }
 0x3a5   :  { %v1748_v23 = vadd.f32 %v3166_v63, %v1747_v22  ;;  %v1749_v24 = vpop.f32.mrb[71].mxu1 }
 0x3a7   :  { %1878 = vst [vmem:[%s3305_s9 + $0x38] sm:$0xff] %v1748_v23 }
 0x3a8   :  { %v1752_v25 = vpop.f32.mrb[72].mxu1 }
 0x3a9   :  { %v1753_v26 = vadd.f32 %v3166_v63, %v1752_v25  ;;  %v1754_v27 = vpop.f32.mrb[73].mxu1 }
 0x3ab   :  { %1879 = vst [vmem:[%s3305_s9 + $0x40] sm:$0xff] %v1753_v26 }
 0x3ac   :  { %v1757_v28 = vpop.f32.mrb[74].mxu1 }
 0x3ad   :  { %v1758_v29 = vadd.f32 %v3166_v63, %v1757_v28  ;;  %v1759_v30 = vpop.f32.mrb[75].mxu1 }
 0x3af   :  { %1880 = vst [vmem:[%s3305_s9 + $0x48] sm:$0xff] %v1758_v29 }
 0x3b0   :  { %v1762_v31 = vpop.f32.mrb[76].mxu1 }
 0x3b1   :  { %v1763_v32 = vadd.f32 %v3166_v63, %v1762_v31  ;;  %v1764_v33 = vpop.f32.mrb[77].mxu1 }
 0x3b3   :  { %1881 = vst [vmem:[%s3305_s9 + $0x50] sm:$0xff] %v1763_v32 }
 0x3b4   :  { %v1767_v34 = vpop.f32.mrb[78].mxu1 }
 0x3b5   :  { %v1768_v35 = vadd.f32 %v3166_v63, %v1767_v34  ;;  %v1769_v36 = vpop.f32.mrb[79].mxu1 }
 0x3b7   :  { %1882 = vst [vmem:[%s3305_s9 + $0x58] sm:$0xff] %v1768_v35 }
 0x3b8   :  { %v1772_v37 = vpop.f32.mrb[80].mxu1 }
 0x3b9   :  { %v1773_v38 = vadd.f32 %v3166_v63, %v1772_v37  ;;  %v1774_v39 = vpop.f32.mrb[81].mxu1 }
 0x3bb   :  { %1883 = vst [vmem:[%s3305_s9 + $0x60] sm:$0xff] %v1773_v38 }
 0x3bc   :  { %v1777_v40 = vpop.f32.mrb[82].mxu1 }
 0x3bd   :  { %v1778_v41 = vadd.f32 %v3166_v63, %v1777_v40  ;;  %v1779_v42 = vpop.f32.mrb[83].mxu1 }
 0x3bf   :  { %1884 = vst [vmem:[%s3305_s9 + $0x68] sm:$0xff] %v1778_v41 }
 0x3c0   :  { %v1782_v43 = vpop.f32.mrb[84].mxu1 }
 0x3c1   :  { %v1783_v44 = vadd.f32 %v3166_v63, %v1782_v43  ;;  %v1784_v45 = vpop.f32.mrb[85].mxu1 }
 0x3c3   :  { %1885 = vst [vmem:[%s3305_s9 + $0x70] sm:$0xff] %v1783_v44 }
 0x3c4   :  { %v1787_v13 = vpop.f32.mrb[86].mxu1 }
 0x3c5   :  { %v1788_v16 = vadd.f32 %v3166_v63, %v1787_v13  ;;  %v1789_v47 = vpop.f32.mrb[87].mxu1 }
 0x3c7   :  { %1886 = vst [vmem:[%s3305_s9 + $0x78] sm:$0xff] %v1788_v16 }
 0x3c8   :  { %v1792_v48 = vpop.f32.mrb[88].mxu1 }
 0x3c9   :  { %v1793_v49 = vadd.f32 %v3166_v63, %v1792_v48  ;;  %v1794_v50 = vpop.f32.mrb[89].mxu1 }
 0x3cb   :  { %1887 = vst [vmem:[%s3305_s9 + $0x80] sm:$0xff] %v1793_v49 }
 0x3cc   :  { %v1797_v52 = vpop.f32.mrb[90].mxu1 }
 0x3cd   :  { %v1798_v54 = vadd.f32 %v3166_v63, %v1797_v52  ;;  %v1799_v3 = vpop.f32.mrb[91].mxu1 }
 0x3cf   :  { %1888 = vst [vmem:[%s3305_s9 + $0x88] sm:$0xff] %v1798_v54 }
 0x3d0   :  { %v1802_v46 = vpop.f32.mrb[92].mxu1 }
 0x3d1   :  { %v1803_v55 = vadd.f32 %v3166_v63, %v1802_v46  ;;  %v1804_v56 = vpop.f32.mrb[93].mxu1 }
 0x3d3   :  { %1889 = vst [vmem:[%s3305_s9 + $0x90] sm:$0xff] %v1803_v55 }
 0x3d4   :  { %v1807_v57 = vpop.f32.mrb[94].mxu1 }
 0x3d5   :  { %v1808_v58 = vadd.f32 %v3166_v63, %v1807_v57  ;;  %v1809_v59 = vpop.f32.mrb[95].mxu1 }
 0x3d7   :  { %1890 = vst [vmem:[%s3305_s9 + $0x98] sm:$0xff] %v1808_v58 }
 0x3d8   :  { %v1812_v60 = vpop.f32.mrb[96].mxu1 }
 0x3d9   :  { %v1813_v61 = vadd.f32 %v3166_v63, %v1812_v60  ;;  %v1814_v62 = vpop.f32.mrb[97].mxu1 }
 0x3db   :  { %1891 = vst [vmem:[%s3305_s9 + $0xa0] sm:$0xff] %v1813_v61 }
 0x3dc   :  { %v1817_v51 = vpop.f32.mrb[98].mxu1 }
 0x3dd   :  { %v1818_v53 = vadd.f32 %v3166_v63, %v1817_v51  ;;  %v1819_v7 = vpop.f32.mrb[99].mxu1 }
 0x3df   :  { %1892 = vst [vmem:[%s3305_s9 + $0xa8] sm:$0xff] %v1818_v53 }
 0x3e0   :  { %v1822_v0 = vpop.f32.mrb[100].mxu1 }
 0x3e1   :  { %v1823_v1 = vadd.f32 %v3166_v63, %v1822_v0  ;;  %v1824_v9 = vpop.f32.mrb[101].mxu1 }
 0x3e3   :  { %1893 = vst [vmem:[%s3305_s9 + $0xb0] sm:$0xff] %v1823_v1 }
 0x3e4   :  { %v1827_v2 = vpop.f32.mrb[102].mxu1 }
 0x3e5   :  { %v1828_v4 = vadd.f32 %v3166_v63, %v1827_v2  ;;  %v1829_v5 = vpop.f32.mrb[103].mxu1 }
 0x3e7   :  { %1894 = vst [vmem:[%s3305_s9 + $0xb8] sm:$0xff] %v1828_v4 }
 0x3e8   :  { %v1832_v6 = vpop.f32.mrb[104].mxu1 }
 0x3e9   :  { %v1833_v8 = vadd.f32 %v3166_v63, %v1832_v6  ;;  %v1834_v10 = vpop.f32.mrb[105].mxu1 }
 0x3eb   :  { %1895 = vst [vmem:[%s3305_s9 + $0xc0] sm:$0xff] %v1833_v8 }
 0x3ec   :  { %v1837_v11 = vpop.f32.mrb[106].mxu1 }
 0x3ed   :  { %v1838_v12 = vadd.f32 %v3166_v63, %v1837_v11  ;;  %v1839_v14 = vpop.f32.mrb[107].mxu1 }
 0x3ef   :  { %1896 = vst [vmem:[%s3305_s9 + $0xc8] sm:$0xff] %v1838_v12 }
 0x3f0   :  { %v1842_v15 = vpop.f32.mrb[108].mxu1 }
 0x3f1   :  { %v1843_v17 = vadd.f32 %v3166_v63, %v1842_v15  ;;  %v1844_v18 = vpop.f32.mrb[109].mxu1 }
 0x3f3   :  { %1897 = vst [vmem:[%s3305_s9 + $0xd0] sm:$0xff] %v1843_v17 }
 0x3f4   :  { %v1847_v19 = vpop.f32.mrb[110].mxu1 }
 0x3f5   :  { %v1848_v20 = vadd.f32 %v3166_v63, %v1847_v19  ;;  %v1849_v21 = vpop.f32.mrb[111].mxu1 }
 0x3f7   :  { %1898 = vst [vmem:[%s3305_s9 + $0xd8] sm:$0xff] %v1848_v20 }
 0x3f8   :  { %v1852_v22 = vpop.f32.mrb[112].mxu1 }
 0x3f9   :  { %v1853_v23 = vadd.f32 %v3166_v63, %v1852_v22  ;;  %v1854_v24 = vpop.f32.mrb[113].mxu1 }
 0x3fb   :  { %1899 = vst [vmem:[%s3305_s9 + $0xe0] sm:$0xff] %v1853_v23 }
 0x3fc   :  { %v1857_v25 = vpop.f32.mrb[114].mxu1 }
 0x3fd   :  { %v1858_v26 = vadd.f32 %v3166_v63, %v1857_v25  ;;  %v1859_v27 = vpop.f32.mrb[115].mxu1 }
 0x3ff   :  { %1900 = vst [vmem:[%s3305_s9 + $0xe8] sm:$0xff] %v1858_v26 }
 0x400   :  { %v1862_v28 = vpop.f32.mrb[116].mxu1 }
 0x401   :  { %v1863_v29 = vadd.f32 %v3166_v63, %v1862_v28  ;;  %v1864_v30 = vpop.f32.mrb[117].mxu1 }
 0x403   :  { %1901 = vst [vmem:[%s3305_s9 + $0xf0] sm:$0xff] %v1863_v29 }
 0x404   :  { %v1867_v31 = vpop.f32.mrb[118].mxu1 }
 0x405   :  { %v1868_v32 = vadd.f32 %v3166_v63, %v1867_v31  ;;  %v1869_v33 = vpop.f32.mrb[119].mxu1 }
 0x407   :  { %1902 = vst [vmem:[%s3305_s9 + $0xf8] sm:$0xff] %v1868_v32 }

</bundles_post_ra>
